<compile_context>
chip_gen: v7x
topology: tpu7x:2x2x1
jax: 0.10.0
libtpu: 0.0.40
codegen_flags: <defaults>
</compile_context>

<pallas_src>
import functools

import numpy as np
import jax
import jax.numpy as jnp
from jax import lax
from jax.experimental import pallas as pl
from jax.experimental.pallas import tpu as pltpu


# ----------------------------- fused MBConv kernel -----------------------------

def _mbconv_kernel(
    x_ref,       # (S2*Hq, Wq_p*C_in)   bf16  phase-split, lane-merged input
    mask_ref,    # (S2*Hq, Wq_p*C_mid)  f32   padding-validity mask
    w_exp_ref,   # (Wq_p*C_in, Wq_p*C_mid) bf16 block-diag expand (BN scale folded)
    b_exp_ref,   # (1, Wq_p*C_mid) f32
    w_dw_ref,    # (k*k, Wo*C_mid) f32  lane-tiled depthwise taps (BN scale folded)
    b_dw_ref,    # (1, Wo*C_mid) f32
    w_proj_ref,  # (Wo*C_mid, Wo*C_out) bf16 block-diag project (BN scale folded)
    b_proj_ref,  # (1, Wo*C_out) f32
    out_ref,     # (Ho, Wo*C_out) bf16  lane-dense output tile
    exp_ref,     # VMEM scratch (S2*Hq, Wq_p*C_mid) bf16
    *, k, stride, pad, hq, ho, wo, c_in, c_mid, skip):

  # ---- 1x1 expand (+ folded BN) + ReLU + padding mask: one MXU matmul ----
  xe = jnp.dot(x_ref[...], w_exp_ref[...], preferred_element_type=jnp.float32)
  xe = jnp.maximum(xe + b_exp_ref[...], 0.0) * mask_ref[...]
  exp_ref[...] = xe.astype(exp_ref.dtype)

  # ---- k x k depthwise (stride folded into the phase layout) + BN + ReLU ----
  # Every tap is one contiguous whole-tile slice of the VMEM scratch.
  w_dw = w_dw_ref[...]                                  # hoisted once
  acc = jnp.zeros((ho, wo * c_mid), jnp.float32)
  for di in range(k):
    pr, ar = di % stride, di // stride
    for dj in range(k):
      pc, ac = dj % stride, dj // stride
      row0 = (pr * stride + pc) * hq + ar
      patch = exp_ref[pl.ds(row0, ho), pl.ds(ac * c_mid, wo * c_mid)]
      t = di * k + dj
      acc = acc + patch.astype(jnp.float32) * w_dw[t:t + 1, :]
  y = jnp.maximum(acc + b_dw_ref[...], 0.0)

  # ---- 1x1 project (+ folded BN) (+ residual): one MXU matmul, dense store ----
  proj = jnp.dot(y.astype(w_proj_ref.dtype), w_proj_ref[...],
                 preferred_element_type=jnp.float32)
  proj = proj + b_proj_ref[...]
  if skip:
    # residual = centre pixels of the already-resident input tile,
    # one whole-tile slice + one vector add (stride==1, C_in==C_out).
    res = x_ref[pl.ds(pad, ho), pl.ds(pad * c_in, wo * c_in)]
    proj = proj + res.astype(jnp.float32)
  out_ref[...] = proj.astype(out_ref.dtype)


# ----------------------------- VMEM footprint helper -----------------------------

def _round_up(x, m):
  return -(-x // m) * m


def _vmem_block_bytes(shape, dtype):
  """Padding-aware VMEM footprint of one buffer (last 2 dims tiled)."""
  itemsize = jnp.dtype(dtype).itemsize
  sub = {4: 8, 2: 16, 1: 32}.get(itemsize, 8)
  lead = 1
  for d in shape[:-2]:
    lead *= int(d)
  return lead * _round_up(int(shape[-2]), sub) * _round_up(int(shape[-1]), 128) * itemsize


# ----------------------------- layer wrapper -----------------------------

def _mbconv_layer(x_nhwc, p, *, kernel_size, stride, support_skip,
                  vmem_limit=32 * 1024 * 1024):
  n, h, w, c_in = x_nhwc.shape
  c_mid = p["w_exp"].shape[1]
  c_out = p["w_proj"].shape[1]
  k = kernel_size
  pad = (k - 1) // 2
  hp, wp = h + 2 * pad, w + 2 * pad
  ho = (hp - k) // stride + 1
  wo = (wp - k) // stride + 1
  hq = -(-hp // stride)                    # rows per row-phase
  wq = -(-wp // stride)                    # cols per col-phase
  wq_p = _round_up(wq, 8)                  # keep merged lanes 8/128 friendly
  s2 = stride * stride
  r = s2 * hq                              # rows of the flattened phased tile
  l_in = wq_p * c_in
  l_mid = wq_p * c_mid
  skip = bool(support_skip and stride == 1 and c_in == c_out)

  # ---- pad + row/col phase split into the lane-merged layout (small tensor) ----
  x_pad = jnp.pad(x_nhwc, ((0, 0),
                           (pad, hq * stride - h - pad),
                           (pad, wq_p * stride - w - pad),
                           (0, 0)))
  if stride == 1:
    x_flat = x_pad.reshape(n, r, l_in)                       # free reshape
  else:
    x_ph = x_pad.reshape(n, hq, stride, wq_p, stride, c_in)
    x_ph = jnp.transpose(x_ph, (0, 2, 4, 1, 3, 5))           # (n, pr, pc, i, j, c)
    x_flat = x_ph.reshape(n, r, l_in)

  # ---- compile-time padding-validity mask (lane-merged, no ones channel) ----
  ii = np.arange(hq)[None, None, :, None]
  jj = np.arange(wq_p)[None, None, None, :]
  pr = np.arange(stride)[:, None, None, None]
  pc = np.arange(stride)[None, :, None, None]
  row = ii * stride + pr
  col = jj * stride + pc
  valid = ((row >= pad) & (row < pad + h) & (col >= pad) & (col < pad + w))
  mask_np = np.repeat(valid.reshape(r, wq_p).astype(np.float32), c_mid, axis=1)
  mask = jnp.asarray(mask_np)

  # ---- block-diagonal / lane-tiled weights (BN scale pre-folded) ----
  w_exp_f = p["w_exp"] * p["s_exp"]
  w_dw_f = p["w_dw"] * p["s_dw"]
  w_proj_f = p["w_proj"] * p["s_proj"]
  w_exp_bd = jnp.kron(jnp.eye(wq_p, dtype=jnp.float32), w_exp_f).astype(jnp.bfloat16)
  b_exp_t = jnp.tile(p["b_exp"], (1, wq_p))
  w_dw_t = jnp.tile(w_dw_f, (1, wo))
  b_dw_t = jnp.tile(p["b_dw"], (1, wo))
  w_proj_bd = jnp.kron(jnp.eye(wo, dtype=jnp.float32), w_proj_f).astype(jnp.bfloat16)
  b_proj_t = jnp.tile(p["b_proj"], (1, wo))

  small = (mask, w_exp_bd, b_exp_t, w_dw_t, b_dw_t, w_proj_bd, b_proj_t)

  # ---- padding-aware VMEM footprint check ----
  est = (2 * _vmem_block_bytes((r, l_in), jnp.bfloat16)          # x (double buffered)
         + 2 * _vmem_block_bytes((ho, wo * c_out), jnp.bfloat16)  # out (double buffered)
         + _vmem_block_bytes((r, l_mid), jnp.bfloat16)            # exp scratch
         + 2 * sum(_vmem_block_bytes(a.shape, a.dtype) for a in small))
  if est > int(0.75 * vmem_limit):
    # TODO(synk): add output-row tiling with a halo DMA for feature maps this big.
    raise ValueError("MBConv layer VMEM footprint {} B exceeds budget".format(est))

  kernel = functools.partial(
      _mbconv_kernel, k=k, stride=stride, pad=pad, hq=hq, ho=ho, wo=wo,
      c_in=c_in, c_mid=c_mid, skip=skip)

  def _const_spec(a):
    zeros = (0,) * a.ndim
    return pl.BlockSpec(a.shape, lambda bn, _z=zeros: _z)

  out = pl.pallas_call(
      kernel,
      out_shape=jax.ShapeDtypeStruct((n, ho, wo * c_out), jnp.bfloat16),
      grid=(n,),
      in_specs=[pl.BlockSpec((None, r, l_in), lambda bn: (bn, 0, 0))]
               + [_const_spec(a) for a in small],
      out_specs=pl.BlockSpec((None, ho, wo * c_out), lambda bn: (bn, 0, 0)),
      scratch_shapes=[pltpu.VMEM((r, l_mid), jnp.bfloat16)],
      compiler_params=pltpu.CompilerParams(
          dimension_semantics=("parallel",),
          vmem_limit_bytes=vmem_limit),
  )(x_flat, *small)

  return out.reshape(n, ho, wo, c_out)      # contiguous (free) un-merge


# ----------------------------- params / reference -----------------------------

def _fold_bn(key, c, eps):
  kg, kb = jax.random.split(key)
  gamma = 1.0 + 0.1 * jax.random.normal(kg, (1, c), jnp.float32)
  beta = 0.1 * jax.random.normal(kb, (1, c), jnp.float32)
  running_mean = jnp.zeros((1, c), jnp.float32)
  running_var = jnp.ones((1, c), jnp.float32)
  scale = gamma / jnp.sqrt(running_var + eps)
  bias = beta - running_mean * scale
  return scale, bias


def init_mbconv_params(key, c_in, c_out, k, exp_factor, eps):
  c_mid = c_in * exp_factor
  ks = jax.random.split(key, 6)
  w_exp = jax.random.normal(ks[0], (c_in, c_mid), jnp.float32) / (c_in ** 0.5)
  w_dw = jax.random.normal(ks[2], (k * k, c_mid), jnp.float32) / float(k)
  w_proj = jax.random.normal(ks[4], (c_mid, c_out), jnp.float32) / (c_mid ** 0.5)
  s_exp, b_exp = _fold_bn(ks[1], c_mid, eps)
  s_dw, b_dw = _fold_bn(ks[3], c_mid, eps)
  s_proj, b_proj = _fold_bn(ks[5], c_out, eps)
  return dict(w_exp=w_exp, w_dw=w_dw, w_proj=w_proj,
              s_exp=s_exp, b_exp=b_exp, s_dw=s_dw, b_dw=b_dw,
              s_proj=s_proj, b_proj=b_proj)


def _mbconv_reference(x, p, *, kernel_size, stride, support_skip):
  """Pure-JAX f32 reference (same folded-BN inference semantics)."""
  n, h, w, c_in = x.shape
  c_mid = p["w_exp"].shape[1]
  c_out = p["w_proj"].shape[1]
  k = kernel_size
  pad = (k - 1) // 2
  y = jnp.einsum("nhwc,cd->nhwd", x, p["w_exp"])
  y = jnp.maximum(y * p["s_exp"] + p["b_exp"], 0.0)
  y = jnp.pad(y, ((0, 0), (pad, pad), (pad, pad), (0, 0)))
  w_dw = p["w_dw"].reshape(k, k, 1, c_mid)
  z = lax.conv_general_dilated(
      y, w_dw, window_strides=(stride, stride), padding="VALID",
      dimension_numbers=("NHWC", "HWIO", "NHWC"),
      feature_group_count=c_mid)
  z = jnp.maximum(z * p["s_dw"] + p["b_dw"], 0.0)
  o = jnp.einsum("nhwc,cd->nhwd", z, p["w_proj"])
  o = o * p["s_proj"] + p["b_proj"]
  if support_skip and stride == 1 and c_in == c_out:
    o = o + x
  return o


# ------------------------------- Block -------------------------------

class Block:
  """JAX/Pallas equivalent of TiNAS Block with conv_op = MBConv."""

  def __init__(self, key, Bix, C_in, C_out, kernel_size, num_layers,
               exp_factor, stride_first=2, support_skip=True,
               batchnorm_epsilon=1e-5):
    if C_in < 1 or C_out < 1:
      raise ValueError("Wrong Cin,Cout : {},{}".format(C_in, C_out))
    if num_layers < 1:
      raise ValueError("Wrong num_layers : {}".format(num_layers))
    self.kernel_size = kernel_size
    self.support_skip = support_skip
    self.layers = []
    keys = jax.random.split(key, num_layers)
    for layer in range(num_layers):
      stride = stride_first if layer == 0 else 1
      in_ch = C_in if layer == 0 else C_out
      params = init_mbconv_params(keys[layer], in_ch, C_out, kernel_size,
                                  exp_factor, batchnorm_epsilon)
      self.layers.append((params, stride))

  def __call__(self, x_nchw):
    x = jnp.transpose(x_nchw, (0, 2, 3, 1)).astype(jnp.bfloat16)   # NCHW->NHWC
    for params, stride in self.layers:
      x = _mbconv_layer(x, params, kernel_size=self.kernel_size,
                        stride=stride, support_skip=self.support_skip)
    return jnp.transpose(x, (0, 3, 1, 2)).astype(jnp.float32)      # NHWC->NCHW

  def reference(self, x_nchw):
    x = jnp.transpose(x_nchw, (0, 2, 3, 1)).astype(jnp.float32)
    for params, stride in self.layers:
      x = _mbconv_reference(x, params, kernel_size=self.kernel_size,
                            stride=stride, support_skip=self.support_skip)
    return jnp.transpose(x, (0, 3, 1, 2))


# ----------------------------------- main -----------------------------------

if __name__ == "__main__":
  key = jax.random.PRNGKey(0)
  k_param, k_data = jax.random.split(key)

  # Block(Bix=0, C_in=8, C_out=16, kernel_size=3, num_layers=2,
  #       conv_op=MBCONV, exp_factor=4, stride_first=2, support_skip=True)
  block = Block(k_param, Bix=0, C_in=8, C_out=16, kernel_size=3,
                num_layers=2, exp_factor=4, stride_first=2,
                support_skip=True)

  x = jax.random.normal(k_data, (2, 8, 16, 16), jnp.float32)  # NCHW
  fwd = jax.jit(block.__call__)
  out = jax.block_until_ready(fwd(x))
  assert out.shape == (2, 16, 8, 8), out.shape   # stride_first=2 halves spatial

  # Pure-JAX f32 reference check (tolerance covers bf16 activation rounding).
  ref = jax.block_until_ready(block.reference(x))
  err = float(jnp.max(jnp.abs(out - ref) / (jnp.abs(ref) + 1.0)))
  assert err < 0.1, "max relative error {}".format(err)

  print("KERNEL_OK")
</pallas_src>

<mosaic_0001>
module attributes {stable_mosaic.version = 11 : i64} {
  func.func @_mbconv_kernel(%arg0: i32, %arg1: memref<1x36x128xbf16, #tpu.memory_space<vmem>>, %arg2: memref<36x512xf32, #tpu.memory_space<vmem>>, %arg3: memref<128x512xbf16, #tpu.memory_space<vmem>>, %arg4: memref<1x512xf32, #tpu.memory_space<vmem>>, %arg5: memref<9x256xf32, #tpu.memory_space<vmem>>, %arg6: memref<1x256xf32, #tpu.memory_space<vmem>>, %arg7: memref<256x128xbf16, #tpu.memory_space<vmem>>, %arg8: memref<1x128xf32, #tpu.memory_space<vmem>>, %arg9: memref<1x8x128xbf16, #tpu.memory_space<vmem>>, %arg10: memref<36x512xbf16, #tpu.memory_space<vmem>>) attributes {dimension_semantics = [#tpu.dimension_semantics<parallel>], iteration_bounds = array<i64: 2>, scalar_prefetch = 0 : i64, scratch_operands = 1 : i64, tpu.core_type = #tpu.core_type<tc>, window_params = [{transform_indices = @transform_0, window_bounds = array<i64: 1, 36, 128>}, {pipeline_mode = #tpu.pipeline_mode<synchronous>, transform_indices = @transform_1, window_bounds = array<i64: 36, 512>}, {pipeline_mode = #tpu.pipeline_mode<synchronous>, transform_indices = @transform_2, window_bounds = array<i64: 128, 512>}, {pipeline_mode = #tpu.pipeline_mode<synchronous>, transform_indices = @transform_3, window_bounds = array<i64: 1, 512>}, {pipeline_mode = #tpu.pipeline_mode<synchronous>, transform_indices = @transform_4, window_bounds = array<i64: 9, 256>}, {pipeline_mode = #tpu.pipeline_mode<synchronous>, transform_indices = @transform_5, window_bounds = array<i64: 1, 256>}, {pipeline_mode = #tpu.pipeline_mode<synchronous>, transform_indices = @transform_6, window_bounds = array<i64: 256, 128>}, {pipeline_mode = #tpu.pipeline_mode<synchronous>, transform_indices = @transform_7, window_bounds = array<i64: 1, 128>}, {transform_indices = @transform_8, window_bounds = array<i64: 1, 8, 128>}]} {
    %c0 = arith.constant 0 : index
    %c0_0 = arith.constant 0 : index
    %c0_1 = arith.constant 0 : index
    %0 = vector.load %arg1[%c0, %c0_0, %c0_1] : memref<1x36x128xbf16, #tpu.memory_space<vmem>>, vector<1x36x128xbf16>
    %1 = vector.shape_cast %0 : vector<1x36x128xbf16> to vector<36x128xbf16>
    %c0_2 = arith.constant 0 : index
    %c0_3 = arith.constant 0 : index
    %2 = vector.load %arg3[%c0_2, %c0_3] : memref<128x512xbf16, #tpu.memory_space<vmem>>, vector<128x512xbf16>
    %cst = arith.constant dense<0.000000e+00> : vector<36x512xf32>
    %3 = tpu.matmul %1, %2, %cst {dimension_numbers = #tpu.dot_dimension_numbers<[1], [0], [0], [1], [0, 0, 1, 1], [], []>} : vector<36x128xbf16>, vector<128x512xbf16>, vector<36x512xf32> -> vector<36x512xf32>
    %c0_4 = arith.constant 0 : index
    %c0_5 = arith.constant 0 : index
    %4 = vector.load %arg4[%c0_4, %c0_5] : memref<1x512xf32, #tpu.memory_space<vmem>>, vector<1x512xf32>
    %5 = vector.broadcast %4 : vector<1x512xf32> to vector<36x512xf32>
    %6 = arith.addf %3, %5 : vector<36x512xf32>
    %cst_6 = arith.constant 0.000000e+00 : f32
    %7 = vector.broadcast %cst_6 : f32 to vector<36x512xf32>
    %8 = arith.maximumf %6, %7 : vector<36x512xf32>
    %c0_7 = arith.constant 0 : index
    %c0_8 = arith.constant 0 : index
    %9 = vector.load %arg2[%c0_7, %c0_8] : memref<36x512xf32, #tpu.memory_space<vmem>>, vector<36x512xf32>
    %10 = arith.mulf %8, %9 : vector<36x512xf32>
    %11 = arith.truncf %10 : vector<36x512xf32> to vector<36x512xbf16>
    %c0_9 = arith.constant 0 : index
    %c0_10 = arith.constant 0 : index
    %12 = vector.load %arg10[%c0_9, %c0_10] : memref<36x512xbf16, #tpu.memory_space<vmem>>, vector<36x512xbf16>
    tpu.vector_store %arg10[%c0_9, %c0_10], %11 {strides = array<i32>} : memref<36x512xbf16, #tpu.memory_space<vmem>>, vector<36x512xbf16>,
    %c0_11 = arith.constant 0 : index
    %c0_12 = arith.constant 0 : index
    %13 = vector.load %arg5[%c0_11, %c0_12] : memref<9x256xf32, #tpu.memory_space<vmem>>, vector<9x256xf32>
    %cst_13 = arith.constant 0.000000e+00 : f32
    %14 = vector.broadcast %cst_13 : f32 to vector<8x256xf32>
    %c0_14 = arith.constant 0 : index
    %c0_15 = arith.constant 0 : index
    %15 = vector.load %arg10[%c0_14, %c0_15] : memref<36x512xbf16, #tpu.memory_space<vmem>>, vector<8x256xbf16>
    %16 = arith.extf %15 : vector<8x256xbf16> to vector<8x256xf32>
    %17 = vector.extract_strided_slice %13 {offsets = [0, 0], sizes = [1, 256], strides = [1, 1]} : vector<9x256xf32> to vector<1x256xf32>
    %18 = vector.broadcast %17 : vector<1x256xf32> to vector<8x256xf32>
    %19 = arith.mulf %16, %18 : vector<8x256xf32>
    %20 = arith.addf %14, %19 : vector<8x256xf32>
    %c9 = arith.constant 9 : index
    %c0_16 = arith.constant 0 : index
    %21 = vector.load %arg10[%c9, %c0_16] : memref<36x512xbf16, #tpu.memory_space<vmem>>, vector<8x256xbf16>
    %22 = arith.extf %21 : vector<8x256xbf16> to vector<8x256xf32>
    %23 = vector.extract_strided_slice %13 {offsets = [1, 0], sizes = [1, 256], strides = [1, 1]} : vector<9x256xf32> to vector<1x256xf32>
    %24 = vector.broadcast %23 : vector<1x256xf32> to vector<8x256xf32>
    %25 = arith.mulf %22, %24 : vector<8x256xf32>
    %26 = arith.addf %20, %25 : vector<8x256xf32>
    %c0_17 = arith.constant 0 : index
    %c32 = arith.constant 32 : index
    %27 = vector.load %arg10[%c0_17, %c32] : memref<36x512xbf16, #tpu.memory_space<vmem>>, vector<8x256xbf16>
    %28 = arith.extf %27 : vector<8x256xbf16> to vector<8x256xf32>
    %29 = vector.extract_strided_slice %13 {offsets = [2, 0], sizes = [1, 256], strides = [1, 1]} : vector<9x256xf32> to vector<1x256xf32>
    %30 = vector.broadcast %29 : vector<1x256xf32> to vector<8x256xf32>
    %31 = arith.mulf %28, %30 : vector<8x256xf32>
    %32 = arith.addf %26, %31 : vector<8x256xf32>
    %c18 = arith.constant 18 : index
    %c0_18 = arith.constant 0 : index
    %33 = vector.load %arg10[%c18, %c0_18] : memref<36x512xbf16, #tpu.memory_space<vmem>>, vector<8x256xbf16>
    %34 = arith.extf %33 : vector<8x256xbf16> to vector<8x256xf32>
    %35 = vector.extract_strided_slice %13 {offsets = [3, 0], sizes = [1, 256], strides = [1, 1]} : vector<9x256xf32> to vector<1x256xf32>
    %36 = vector.broadcast %35 : vector<1x256xf32> to vector<8x256xf32>
    %37 = arith.mulf %34, %36 : vector<8x256xf32>
    %38 = arith.addf %32, %37 : vector<8x256xf32>
    %c27 = arith.constant 27 : index
    %c0_19 = arith.constant 0 : index
    %39 = vector.load %arg10[%c27, %c0_19] : memref<36x512xbf16, #tpu.memory_space<vmem>>, vector<8x256xbf16>
    %40 = arith.extf %39 : vector<8x256xbf16> to vector<8x256xf32>
    %41 = vector.extract_strided_slice %13 {offsets = [4, 0], sizes = [1, 256], strides = [1, 1]} : vector<9x256xf32> to vector<1x256xf32>
    %42 = vector.broadcast %41 : vector<1x256xf32> to vector<8x256xf32>
    %43 = arith.mulf %40, %42 : vector<8x256xf32>
    %44 = arith.addf %38, %43 : vector<8x256xf32>
    %c18_20 = arith.constant 18 : index
    %c32_21 = arith.constant 32 : index
    %45 = vector.load %arg10[%c18_20, %c32_21] : memref<36x512xbf16, #tpu.memory_space<vmem>>, vector<8x256xbf16>
    %46 = arith.extf %45 : vector<8x256xbf16> to vector<8x256xf32>
    %47 = vector.extract_strided_slice %13 {offsets = [5, 0], sizes = [1, 256], strides = [1, 1]} : vector<9x256xf32> to vector<1x256xf32>
    %48 = vector.broadcast %47 : vector<1x256xf32> to vector<8x256xf32>
    %49 = arith.mulf %46, %48 : vector<8x256xf32>
    %50 = arith.addf %44, %49 : vector<8x256xf32>
    %c1 = arith.constant 1 : index
    %c0_22 = arith.constant 0 : index
    %51 = vector.load %arg10[%c1, %c0_22] : memref<36x512xbf16, #tpu.memory_space<vmem>>, vector<8x256xbf16>
    %52 = arith.extf %51 : vector<8x256xbf16> to vector<8x256xf32>
    %53 = vector.extract_strided_slice %13 {offsets = [6, 0], sizes = [1, 256], strides = [1, 1]} : vector<9x256xf32> to vector<1x256xf32>
    %54 = vector.broadcast %53 : vector<1x256xf32> to vector<8x256xf32>
    %55 = arith.mulf %52, %54 : vector<8x256xf32>
    %56 = arith.addf %50, %55 : vector<8x256xf32>
    %c10 = arith.constant 10 : index
    %c0_23 = arith.constant 0 : index
    %57 = vector.load %arg10[%c10, %c0_23] : memref<36x512xbf16, #tpu.memory_space<vmem>>, vector<8x256xbf16>
    %58 = arith.extf %57 : vector<8x256xbf16> to vector<8x256xf32>
    %59 = vector.extract_strided_slice %13 {offsets = [7, 0], sizes = [1, 256], strides = [1, 1]} : vector<9x256xf32> to vector<1x256xf32>
    %60 = vector.broadcast %59 : vector<1x256xf32> to vector<8x256xf32>
    %61 = arith.mulf %58, %60 : vector<8x256xf32>
    %62 = arith.addf %56, %61 : vector<8x256xf32>
    %c1_24 = arith.constant 1 : index
    %c32_25 = arith.constant 32 : index
    %63 = vector.load %arg10[%c1_24, %c32_25] : memref<36x512xbf16, #tpu.memory_space<vmem>>, vector<8x256xbf16>
    %64 = arith.extf %63 : vector<8x256xbf16> to vector<8x256xf32>
    %65 = vector.extract_strided_slice %13 {offsets = [8, 0], sizes = [1, 256], strides = [1, 1]} : vector<9x256xf32> to vector<1x256xf32>
    %66 = vector.broadcast %65 : vector<1x256xf32> to vector<8x256xf32>
    %67 = arith.mulf %64, %66 : vector<8x256xf32>
    %68 = arith.addf %62, %67 : vector<8x256xf32>
    %c0_26 = arith.constant 0 : index
    %c0_27 = arith.constant 0 : index
    %69 = vector.load %arg6[%c0_26, %c0_27] : memref<1x256xf32, #tpu.memory_space<vmem>>, vector<1x256xf32>
    %70 = vector.broadcast %69 : vector<1x256xf32> to vector<8x256xf32>
    %71 = arith.addf %68, %70 : vector<8x256xf32>
    %cst_28 = arith.constant 0.000000e+00 : f32
    %72 = vector.broadcast %cst_28 : f32 to vector<8x256xf32>
    %73 = arith.maximumf %71, %72 : vector<8x256xf32>
    %74 = arith.truncf %73 : vector<8x256xf32> to vector<8x256xbf16>
    %c0_29 = arith.constant 0 : index
    %c0_30 = arith.constant 0 : index
    %75 = vector.load %arg7[%c0_29, %c0_30] : memref<256x128xbf16, #tpu.memory_space<vmem>>, vector<256x128xbf16>
    %cst_31 = arith.constant dense<0.000000e+00> : vector<8x128xf32>
    %76 = tpu.matmul %74, %75, %cst_31 {dimension_numbers = #tpu.dot_dimension_numbers<[1], [0], [0], [1], [0, 0, 1, 1], [], []>} : vector<8x256xbf16>, vector<256x128xbf16>, vector<8x128xf32> -> vector<8x128xf32>
    %c0_32 = arith.constant 0 : index
    %c0_33 = arith.constant 0 : index
    %77 = vector.load %arg8[%c0_32, %c0_33] : memref<1x128xf32, #tpu.memory_space<vmem>>, vector<1x128xf32>
    %78 = vector.broadcast %77 : vector<1x128xf32> to vector<8x128xf32>
    %79 = arith.addf %76, %78 : vector<8x128xf32>
    %80 = arith.truncf %79 : vector<8x128xf32> to vector<8x128xbf16>
    %c0_34 = arith.constant 0 : index
    %c0_35 = arith.constant 0 : index
    %c0_36 = arith.constant 0 : index
    %81 = vector.load %arg9[%c0_34, %c0_35, %c0_36] : memref<1x8x128xbf16, #tpu.memory_space<vmem>>, vector<1x8x128xbf16>
    %82 = vector.shape_cast %81 : vector<1x8x128xbf16> to vector<8x128xbf16>
    %83 = vector.shape_cast %80 : vector<8x128xbf16> to vector<1x8x128xbf16>
    tpu.vector_store %arg9[%c0_34, %c0_35, %c0_36], %83 {strides = array<i32>} : memref<1x8x128xbf16, #tpu.memory_space<vmem>>, vector<1x8x128xbf16>,
    return
  }
  func.func @transform_0(%arg0: i32) -> (i32, i32, i32) {
    %c0_i32 = arith.constant 0 : i32
    %c0_i32_0 = arith.constant 0 : i32
    %c0_i32_1 = arith.constant 0 : i32
    return %arg0, %c0_i32, %c0_i32_0 : i32, i32, i32
  }
  func.func @transform_1(%arg0: i32) -> (i32, i32) {
    %c0_i32 = arith.constant 0 : i32
    %c0_i32_0 = arith.constant 0 : i32
    %c0_i32_1 = arith.constant 0 : i32
    return %c0_i32, %c0_i32_0 : i32, i32
  }
  func.func @transform_2(%arg0: i32) -> (i32, i32) {
    %c0_i32 = arith.constant 0 : i32
    %c0_i32_0 = arith.constant 0 : i32
    %c0_i32_1 = arith.constant 0 : i32
    return %c0_i32, %c0_i32_0 : i32, i32
  }
  func.func @transform_3(%arg0: i32) -> (i32, i32) {
    %c0_i32 = arith.constant 0 : i32
    %c0_i32_0 = arith.constant 0 : i32
    %c0_i32_1 = arith.constant 0 : i32
    return %c0_i32, %c0_i32_0 : i32, i32
  }
  func.func @transform_4(%arg0: i32) -> (i32, i32) {
    %c0_i32 = arith.constant 0 : i32
    %c0_i32_0 = arith.constant 0 : i32
    %c0_i32_1 = arith.constant 0 : i32
    return %c0_i32, %c0_i32_0 : i32, i32
  }
  func.func @transform_5(%arg0: i32) -> (i32, i32) {
    %c0_i32 = arith.constant 0 : i32
    %c0_i32_0 = arith.constant 0 : i32
    %c0_i32_1 = arith.constant 0 : i32
    return %c0_i32, %c0_i32_0 : i32, i32
  }
  func.func @transform_6(%arg0: i32) -> (i32, i32) {
    %c0_i32 = arith.constant 0 : i32
    %c0_i32_0 = arith.constant 0 : i32
    %c0_i32_1 = arith.constant 0 : i32
    return %c0_i32, %c0_i32_0 : i32, i32
  }
  func.func @transform_7(%arg0: i32) -> (i32, i32) {
    %c0_i32 = arith.constant 0 : i32
    %c0_i32_0 = arith.constant 0 : i32
    %c0_i32_1 = arith.constant 0 : i32
    return %c0_i32, %c0_i32_0 : i32, i32
  }
  func.func @transform_8(%arg0: i32) -> (i32, i32, i32) {
    %c0_i32 = arith.constant 0 : i32
    %c0_i32_0 = arith.constant 0 : i32
    %c0_i32_1 = arith.constant 0 : i32
    return %arg0, %c0_i32, %c0_i32_0 : i32, i32, i32
  }
}

module attributes {stable_mosaic.version = 11 : i64} {
  func.func @_mbconv_kernel(%arg0: i32, %arg1: memref<1x10x256xbf16, #tpu.memory_space<vmem>>, %arg2: memref<10x1024xf32, #tpu.memory_space<vmem>>, %arg3: memref<256x1024xbf16, #tpu.memory_space<vmem>>, %arg4: memref<1x1024xf32, #tpu.memory_space<vmem>>, %arg5: memref<9x512xf32, #tpu.memory_space<vmem>>, %arg6: memref<1x512xf32, #tpu.memory_space<vmem>>, %arg7: memref<512x128xbf16, #tpu.memory_space<vmem>>, %arg8: memref<1x128xf32, #tpu.memory_space<vmem>>, %arg9: memref<1x8x128xbf16, #tpu.memory_space<vmem>>, %arg10: memref<10x1024xbf16, #tpu.memory_space<vmem>>) attributes {dimension_semantics = [#tpu.dimension_semantics<parallel>], iteration_bounds = array<i64: 2>, scalar_prefetch = 0 : i64, scratch_operands = 1 : i64, tpu.core_type = #tpu.core_type<tc>, window_params = [{transform_indices = @transform_0, window_bounds = array<i64: 1, 10, 256>}, {pipeline_mode = #tpu.pipeline_mode<synchronous>, transform_indices = @transform_1, window_bounds = array<i64: 10, 1024>}, {pipeline_mode = #tpu.pipeline_mode<synchronous>, transform_indices = @transform_2, window_bounds = array<i64: 256, 1024>}, {pipeline_mode = #tpu.pipeline_mode<synchronous>, transform_indices = @transform_3, window_bounds = array<i64: 1, 1024>}, {pipeline_mode = #tpu.pipeline_mode<synchronous>, transform_indices = @transform_4, window_bounds = array<i64: 9, 512>}, {pipeline_mode = #tpu.pipeline_mode<synchronous>, transform_indices = @transform_5, window_bounds = array<i64: 1, 512>}, {pipeline_mode = #tpu.pipeline_mode<synchronous>, transform_indices = @transform_6, window_bounds = array<i64: 512, 128>}, {pipeline_mode = #tpu.pipeline_mode<synchronous>, transform_indices = @transform_7, window_bounds = array<i64: 1, 128>}, {transform_indices = @transform_8, window_bounds = array<i64: 1, 8, 128>}]} {
    %c0 = arith.constant 0 : index
    %c0_0 = arith.constant 0 : index
    %c0_1 = arith.constant 0 : index
    %0 = vector.load %arg1[%c0, %c0_0, %c0_1] : memref<1x10x256xbf16, #tpu.memory_space<vmem>>, vector<1x10x256xbf16>
    %1 = vector.shape_cast %0 : vector<1x10x256xbf16> to vector<10x256xbf16>
    %c0_2 = arith.constant 0 : index
    %c0_3 = arith.constant 0 : index
    %2 = vector.load %arg3[%c0_2, %c0_3] : memref<256x1024xbf16, #tpu.memory_space<vmem>>, vector<256x1024xbf16>
    %cst = arith.constant dense<0.000000e+00> : vector<10x1024xf32>
    %3 = tpu.matmul %1, %2, %cst {dimension_numbers = #tpu.dot_dimension_numbers<[1], [0], [0], [1], [0, 0, 1, 1], [], []>} : vector<10x256xbf16>, vector<256x1024xbf16>, vector<10x1024xf32> -> vector<10x1024xf32>
    %c0_4 = arith.constant 0 : index
    %c0_5 = arith.constant 0 : index
    %4 = vector.load %arg4[%c0_4, %c0_5] : memref<1x1024xf32, #tpu.memory_space<vmem>>, vector<1x1024xf32>
    %5 = vector.broadcast %4 : vector<1x1024xf32> to vector<10x1024xf32>
    %6 = arith.addf %3, %5 : vector<10x1024xf32>
    %cst_6 = arith.constant 0.000000e+00 : f32
    %7 = vector.broadcast %cst_6 : f32 to vector<10x1024xf32>
    %8 = arith.maximumf %6, %7 : vector<10x1024xf32>
    %c0_7 = arith.constant 0 : index
    %c0_8 = arith.constant 0 : index
    %9 = vector.load %arg2[%c0_7, %c0_8] : memref<10x1024xf32, #tpu.memory_space<vmem>>, vector<10x1024xf32>
    %10 = arith.mulf %8, %9 : vector<10x1024xf32>
    %11 = arith.truncf %10 : vector<10x1024xf32> to vector<10x1024xbf16>
    %c0_9 = arith.constant 0 : index
    %c0_10 = arith.constant 0 : index
    %12 = vector.load %arg10[%c0_9, %c0_10] : memref<10x1024xbf16, #tpu.memory_space<vmem>>, vector<10x1024xbf16>
    tpu.vector_store %arg10[%c0_9, %c0_10], %11 {strides = array<i32>} : memref<10x1024xbf16, #tpu.memory_space<vmem>>, vector<10x1024xbf16>,
    %c0_11 = arith.constant 0 : index
    %c0_12 = arith.constant 0 : index
    %13 = vector.load %arg5[%c0_11, %c0_12] : memref<9x512xf32, #tpu.memory_space<vmem>>, vector<9x512xf32>
    %cst_13 = arith.constant 0.000000e+00 : f32
    %14 = vector.broadcast %cst_13 : f32 to vector<8x512xf32>
    %c0_14 = arith.constant 0 : index
    %c0_15 = arith.constant 0 : index
    %15 = vector.load %arg10[%c0_14, %c0_15] : memref<10x1024xbf16, #tpu.memory_space<vmem>>, vector<8x512xbf16>
    %16 = arith.extf %15 : vector<8x512xbf16> to vector<8x512xf32>
    %17 = vector.extract_strided_slice %13 {offsets = [0, 0], sizes = [1, 512], strides = [1, 1]} : vector<9x512xf32> to vector<1x512xf32>
    %18 = vector.broadcast %17 : vector<1x512xf32> to vector<8x512xf32>
    %19 = arith.mulf %16, %18 : vector<8x512xf32>
    %20 = arith.addf %14, %19 : vector<8x512xf32>
    %c0_16 = arith.constant 0 : index
    %c64 = arith.constant 64 : index
    %21 = vector.load %arg10[%c0_16, %c64] : memref<10x1024xbf16, #tpu.memory_space<vmem>>, vector<8x512xbf16>
    %22 = arith.extf %21 : vector<8x512xbf16> to vector<8x512xf32>
    %23 = vector.extract_strided_slice %13 {offsets = [1, 0], sizes = [1, 512], strides = [1, 1]} : vector<9x512xf32> to vector<1x512xf32>
    %24 = vector.broadcast %23 : vector<1x512xf32> to vector<8x512xf32>
    %25 = arith.mulf %22, %24 : vector<8x512xf32>
    %26 = arith.addf %20, %25 : vector<8x512xf32>
    %c0_17 = arith.constant 0 : index
    %c128 = arith.constant 128 : index
    %27 = vector.load %arg10[%c0_17, %c128] : memref<10x1024xbf16, #tpu.memory_space<vmem>>, vector<8x512xbf16>
    %28 = arith.extf %27 : vector<8x512xbf16> to vector<8x512xf32>
    %29 = vector.extract_strided_slice %13 {offsets = [2, 0], sizes = [1, 512], strides = [1, 1]} : vector<9x512xf32> to vector<1x512xf32>
    %30 = vector.broadcast %29 : vector<1x512xf32> to vector<8x512xf32>
    %31 = arith.mulf %28, %30 : vector<8x512xf32>
    %32 = arith.addf %26, %31 : vector<8x512xf32>
    %c1 = arith.constant 1 : index
    %c0_18 = arith.constant 0 : index
    %33 = vector.load %arg10[%c1, %c0_18] : memref<10x1024xbf16, #tpu.memory_space<vmem>>, vector<8x512xbf16>
    %34 = arith.extf %33 : vector<8x512xbf16> to vector<8x512xf32>
    %35 = vector.extract_strided_slice %13 {offsets = [3, 0], sizes = [1, 512], strides = [1, 1]} : vector<9x512xf32> to vector<1x512xf32>
    %36 = vector.broadcast %35 : vector<1x512xf32> to vector<8x512xf32>
    %37 = arith.mulf %34, %36 : vector<8x512xf32>
    %38 = arith.addf %32, %37 : vector<8x512xf32>
    %c1_19 = arith.constant 1 : index
    %c64_20 = arith.constant 64 : index
    %39 = vector.load %arg10[%c1_19, %c64_20] : memref<10x1024xbf16, #tpu.memory_space<vmem>>, vector<8x512xbf16>
    %40 = arith.extf %39 : vector<8x512xbf16> to vector<8x512xf32>
    %41 = vector.extract_strided_slice %13 {offsets = [4, 0], sizes = [1, 512], strides = [1, 1]} : vector<9x512xf32> to vector<1x512xf32>
    %42 = vector.broadcast %41 : vector<1x512xf32> to vector<8x512xf32>
    %43 = arith.mulf %40, %42 : vector<8x512xf32>
    %44 = arith.addf %38, %43 : vector<8x512xf32>
    %c1_21 = arith.constant 1 : index
    %c128_22 = arith.constant 128 : index
    %45 = vector.load %arg10[%c1_21, %c128_22] : memref<10x1024xbf16, #tpu.memory_space<vmem>>, vector<8x512xbf16>
    %46 = arith.extf %45 : vector<8x512xbf16> to vector<8x512xf32>
    %47 = vector.extract_strided_slice %13 {offsets = [5, 0], sizes = [1, 512], strides = [1, 1]} : vector<9x512xf32> to vector<1x512xf32>
    %48 = vector.broadcast %47 : vector<1x512xf32> to vector<8x512xf32>
    %49 = arith.mulf %46, %48 : vector<8x512xf32>
    %50 = arith.addf %44, %49 : vector<8x512xf32>
    %c2 = arith.constant 2 : index
    %c0_23 = arith.constant 0 : index
    %51 = vector.load %arg10[%c2, %c0_23] : memref<10x1024xbf16, #tpu.memory_space<vmem>>, vector<8x512xbf16>
    %52 = arith.extf %51 : vector<8x512xbf16> to vector<8x512xf32>
    %53 = vector.extract_strided_slice %13 {offsets = [6, 0], sizes = [1, 512], strides = [1, 1]} : vector<9x512xf32> to vector<1x512xf32>
    %54 = vector.broadcast %53 : vector<1x512xf32> to vector<8x512xf32>
    %55 = arith.mulf %52, %54 : vector<8x512xf32>
    %56 = arith.addf %50, %55 : vector<8x512xf32>
    %c2_24 = arith.constant 2 : index
    %c64_25 = arith.constant 64 : index
    %57 = vector.load %arg10[%c2_24, %c64_25] : memref<10x1024xbf16, #tpu.memory_space<vmem>>, vector<8x512xbf16>
    %58 = arith.extf %57 : vector<8x512xbf16> to vector<8x512xf32>
    %59 = vector.extract_strided_slice %13 {offsets = [7, 0], sizes = [1, 512], strides = [1, 1]} : vector<9x512xf32> to vector<1x512xf32>
    %60 = vector.broadcast %59 : vector<1x512xf32> to vector<8x512xf32>
    %61 = arith.mulf %58, %60 : vector<8x512xf32>
    %62 = arith.addf %56, %61 : vector<8x512xf32>
    %c2_26 = arith.constant 2 : index
    %c128_27 = arith.constant 128 : index
    %63 = vector.load %arg10[%c2_26, %c128_27] : memref<10x1024xbf16, #tpu.memory_space<vmem>>, vector<8x512xbf16>
    %64 = arith.extf %63 : vector<8x512xbf16> to vector<8x512xf32>
    %65 = vector.extract_strided_slice %13 {offsets = [8, 0], sizes = [1, 512], strides = [1, 1]} : vector<9x512xf32> to vector<1x512xf32>
    %66 = vector.broadcast %65 : vector<1x512xf32> to vector<8x512xf32>
    %67 = arith.mulf %64, %66 : vector<8x512xf32>
    %68 = arith.addf %62, %67 : vector<8x512xf32>
    %c0_28 = arith.constant 0 : index
    %c0_29 = arith.constant 0 : index
    %69 = vector.load %arg6[%c0_28, %c0_29] : memref<1x512xf32, #tpu.memory_space<vmem>>, vector<1x512xf32>
    %70 = vector.broadcast %69 : vector<1x512xf32> to vector<8x512xf32>
    %71 = arith.addf %68, %70 : vector<8x512xf32>
    %cst_30 = arith.constant 0.000000e+00 : f32
    %72 = vector.broadcast %cst_30 : f32 to vector<8x512xf32>
    %73 = arith.maximumf %71, %72 : vector<8x512xf32>
    %74 = arith.truncf %73 : vector<8x512xf32> to vector<8x512xbf16>
    %c0_31 = arith.constant 0 : index
    %c0_32 = arith.constant 0 : index
    %75 = vector.load %arg7[%c0_31, %c0_32] : memref<512x128xbf16, #tpu.memory_space<vmem>>, vector<512x128xbf16>
    %cst_33 = arith.constant dense<0.000000e+00> : vector<8x128xf32>
    %76 = tpu.matmul %74, %75, %cst_33 {dimension_numbers = #tpu.dot_dimension_numbers<[1], [0], [0], [1], [0, 0, 1, 1], [], []>} : vector<8x512xbf16>, vector<512x128xbf16>, vector<8x128xf32> -> vector<8x128xf32>
    %c0_34 = arith.constant 0 : index
    %c0_35 = arith.constant 0 : index
    %77 = vector.load %arg8[%c0_34, %c0_35] : memref<1x128xf32, #tpu.memory_space<vmem>>, vector<1x128xf32>
    %78 = vector.broadcast %77 : vector<1x128xf32> to vector<8x128xf32>
    %79 = arith.addf %76, %78 : vector<8x128xf32>
    %c0_36 = arith.constant 0 : index
    %c1_37 = arith.constant 1 : index
    %c16 = arith.constant 16 : index
    %80 = vector.load %arg1[%c0_36, %c1_37, %c16] : memref<1x10x256xbf16, #tpu.memory_space<vmem>>, vector<1x8x128xbf16>
    %81 = vector.shape_cast %80 : vector<1x8x128xbf16> to vector<8x128xbf16>
    %82 = arith.extf %81 : vector<8x128xbf16> to vector<8x128xf32>
    %83 = arith.addf %79, %82 : vector<8x128xf32>
    %84 = arith.truncf %83 : vector<8x128xf32> to vector<8x128xbf16>
    %c0_38 = arith.constant 0 : index
    %c0_39 = arith.constant 0 : index
    %c0_40 = arith.constant 0 : index
    %85 = vector.load %arg9[%c0_38, %c0_39, %c0_40] : memref<1x8x128xbf16, #tpu.memory_space<vmem>>, vector<1x8x128xbf16>
    %86 = vector.shape_cast %85 : vector<1x8x128xbf16> to vector<8x128xbf16>
    %87 = vector.shape_cast %84 : vector<8x128xbf16> to vector<1x8x128xbf16>
    tpu.vector_store %arg9[%c0_38, %c0_39, %c0_40], %87 {strides = array<i32>} : memref<1x8x128xbf16, #tpu.memory_space<vmem>>, vector<1x8x128xbf16>,
    return
  }
  func.func @transform_0(%arg0: i32) -> (i32, i32, i32) {
    %c0_i32 = arith.constant 0 : i32
    %c0_i32_0 = arith.constant 0 : i32
    %c0_i32_1 = arith.constant 0 : i32
    return %arg0, %c0_i32, %c0_i32_0 : i32, i32, i32
  }
  func.func @transform_1(%arg0: i32) -> (i32, i32) {
    %c0_i32 = arith.constant 0 : i32
    %c0_i32_0 = arith.constant 0 : i32
    %c0_i32_1 = arith.constant 0 : i32
    return %c0_i32, %c0_i32_0 : i32, i32
  }
  func.func @transform_2(%arg0: i32) -> (i32, i32) {
    %c0_i32 = arith.constant 0 : i32
    %c0_i32_0 = arith.constant 0 : i32
    %c0_i32_1 = arith.constant 0 : i32
    return %c0_i32, %c0_i32_0 : i32, i32
  }
  func.func @transform_3(%arg0: i32) -> (i32, i32) {
    %c0_i32 = arith.constant 0 : i32
    %c0_i32_0 = arith.constant 0 : i32
    %c0_i32_1 = arith.constant 0 : i32
    return %c0_i32, %c0_i32_0 : i32, i32
  }
  func.func @transform_4(%arg0: i32) -> (i32, i32) {
    %c0_i32 = arith.constant 0 : i32
    %c0_i32_0 = arith.constant 0 : i32
    %c0_i32_1 = arith.constant 0 : i32
    return %c0_i32, %c0_i32_0 : i32, i32
  }
  func.func @transform_5(%arg0: i32) -> (i32, i32) {
    %c0_i32 = arith.constant 0 : i32
    %c0_i32_0 = arith.constant 0 : i32
    %c0_i32_1 = arith.constant 0 : i32
    return %c0_i32, %c0_i32_0 : i32, i32
  }
  func.func @transform_6(%arg0: i32) -> (i32, i32) {
    %c0_i32 = arith.constant 0 : i32
    %c0_i32_0 = arith.constant 0 : i32
    %c0_i32_1 = arith.constant 0 : i32
    return %c0_i32, %c0_i32_0 : i32, i32
  }
  func.func @transform_7(%arg0: i32) -> (i32, i32) {
    %c0_i32 = arith.constant 0 : i32
    %c0_i32_0 = arith.constant 0 : i32
    %c0_i32_1 = arith.constant 0 : i32
    return %c0_i32, %c0_i32_0 : i32, i32
  }
  func.func @transform_8(%arg0: i32) -> (i32, i32, i32) {
    %c0_i32 = arith.constant 0 : i32
    %c0_i32_0 = arith.constant 0 : i32
    %c0_i32_1 = arith.constant 0 : i32
    return %arg0, %c0_i32, %c0_i32_0 : i32, i32, i32
  }
}

</mosaic_0001>

<bundles_post_ra>
// kernel: tile.42
= control target key start
LH: loop header
LB: loop body
LE: loop exit
PB: predicated region body
PF: predicated region fallthrough
CT: control target
= control target key end

     0   :  { %vm32_vm0 = vcmask 1047556   ;;  %s50_s6 = smov 3  ;;  %s149_s15 = smov 96   ;;  %vm3_vm1 = vcmask 261120   ;;  %vm36_vm2 = vcmask 1048320   ;;  %vm65_vm3 = vcmask 785920   ;;  %s285_s0 = inlined_call_operand.vmem [shape: f32[9,8,32], index: 0, kind: input, shape index: {}]   ;;  %s286_s1 = inlined_call_operand.vmem [shape: f32[9,256], index: 1, kind: output, shape index: {}]  }
   0x1   :  { %v125_v0 = vld [vmem:[%s285_s0 + $0x3] ss:$8 sm:$0xf]   ;;  %v127_v4 = vld [vmem:[%s285_s0 + $0x7] ss:$8 sm:$0xf]  }
   0x2   :  { %v126_v1 = vld [vmem:[%s285_s0 + $0x3] ss:$8 sm:$0xf0]   ;;  %v128_v5 = vld [vmem:[%s285_s0 + $0x7] ss:$8 sm:$0xf0]  }
   0x3   :  { %v33_v2 = vsel %vm32_vm0, %v126_v1, %v125_v0  ;;  %v130_v3 = vld [vmem:[%s285_s0 + $0x43] ss:$4 sm:%s50_s6]   ;;  %v132_v6 = vld [vmem:[%s285_s0 + $0x2] ss:$8 sm:$0xf]   ;;  %v43_v7 = vsel %vm32_vm0, %v128_v5, %v127_v4  ;;  %s79_s26 = smov 3 }
   0x4   :  { %34 = vrot.lane.b32.xlu0 %v33_v2, %s149_s15  ;;  %52 = vrot.lane.b32.xlu1 %v130_v3, %s149_s15  ;;  %v133_v8 = vld [vmem:[%s285_s0 + $0x2] ss:$8 sm:$0xf0]   ;;  %v134_v9 = vld [vmem:[%s285_s0 + $0x6] ss:$8 sm:$0xf]  }
   0x5   :  { %v62_v10 = vsel %vm32_vm0, %v133_v8, %v132_v6  ;;  %v135_v11 = vld [vmem:[%s285_s0 + $0x6] ss:$8 sm:$0xf0]   ;;  %s150_s27 = smov 64   ;;  %s23_s9 = smov 3  ;;  %vm94_vm4 = vcmask 523520  }
   0x6   :  { %v139_v12 = vld [vmem:[%s285_s0 + $0x1] ss:$8 sm:$0xf]   ;;  %v141_v14 = vld [vmem:[%s285_s0 + $0x5] ss:$8 sm:$0xf]   ;;  %v72_v15 = vsel %vm32_vm0, %v135_v11, %v134_v9 }
   0x7   :  { %v140_v13 = vld [vmem:[%s285_s0 + $0x1] ss:$8 sm:$0xf0]   ;;  %v137_v16 = vld [vmem:[%s285_s0 + $0x42] ss:$4 sm:%s79_s26]   ;;  %s151_s6 = smov 32  }
   0x8   :  { %44 = vrot.lane.b32.xlu0 %v43_v7, %s149_s15  ;;  %63 = vrot.lane.b32.xlu1 %v62_v10, %s150_s27  ;;  %v142_v17 = vld [vmem:[%s285_s0 + $0x5] ss:$8 sm:$0xf0]   ;;  %v2_v19 = vld [vmem:[%s285_s0] ss:$4 sm:$0xff]   ;;  %v91_v21 = vsel %vm32_vm0, %v140_v13, %v139_v12 }
   0x9   :  { %v123_v18 = vld [vmem:[%s285_s0 + $0x40] ss:$4 sm:%s23_s9]   ;;  %4 = vst.msk [vmem:[%s286_s1] ss:$8 sm:$0x3] %vm3_vm1, %v2_v19   ;;  %v101_v22 = vsel %vm32_vm0, %v142_v17, %v141_v14 }
   0xa   :  { %v118_v20 = vld [vmem:[%s285_s0 + $0x20] ss:$4 sm:$0xff]   ;;  %124 = vst.msk [vmem:[%s286_s1 + $0x10] ss:$8 sm:$0x3] %vm3_vm1, %v123_v18  }
   0xb   :  { %115 = vst.msk [vmem:[%s286_s1 - $0xf] ss:$8 sm:$0xc] %vm3_vm1, %v2_v19   ;;  %116 = vst.msk [vmem:[%s286_s1 - $0x1e] ss:$8 sm:$0x30] %vm3_vm1, %v2_v19  }
   0xc   :  { %117 = vst.msk [vmem:[%s286_s1 - $0x2d] ss:$8 sm:$0xc0] %vm3_vm1, %v2_v19   ;;  %119 = vst.msk [vmem:[%s286_s1 + $0x4] ss:$8 sm:$0x3] %vm3_vm1, %v118_v20   ;;  %73 = vrot.lane.b32.xlu0 %v72_v15, %s150_s27  ;;  %81 = vrot.lane.b32.xlu1 %v137_v16, %s150_s27 }
   0xd   :  { %120 = vst.msk [vmem:[%s286_s1 - $0xb] ss:$8 sm:$0xc] %vm3_vm1, %v118_v20   ;;  %121 = vst.msk [vmem:[%s286_s1 - $0x1a] ss:$8 sm:$0x30] %vm3_vm1, %v118_v20  }
   0xe   :  { %122 = vst.msk [vmem:[%s286_s1 - $0x29] ss:$8 sm:$0xc0] %vm3_vm1, %v118_v20   ;;  %s108_s27 = smov 3 }
   0xf   :  { %v144_v23 = vld [vmem:[%s285_s0 + $0x41] ss:$4 sm:%s108_s27]  }
  0x10   :  { %92 = vrot.lane.b32.xlu0 %v91_v21, %s151_s6  ;;  %102 = vrot.lane.b32.xlu1 %v101_v22, %s151_s6 }
  0x14   :  { %110 = vrot.lane.b32.xlu0 %v144_v23, %s151_s6 }
  0x76   :  { %v35_v24 = vpop.permute.xlu0 %34   ;;  %v53_v25 = vpop.permute.xlu1 %52  }
  0x77   :  { %131 = vst.msk [vmem:[%s286_s1 + $0x10] ss:$8 sm:$0x3] %vm36_vm2, %v53_v25   ;;  %37 = vst.msk [vmem:[%s286_s1] sm:$0xff] %vm36_vm2, %v35_v24  }
  0x7a   :  { %v45_v26 = vpop.permute.xlu0 %44   ;;  %v64_v27 = vpop.permute.xlu1 %63  }
  0x7b   :  { %66 = vst.msk [vmem:[%s286_s1] sm:$0xff] %vm65_vm3, %v64_v27  }
  0x7c   :  { %129 = vst.msk [vmem:[%s286_s1 + $0x8] sm:$0xff] %vm36_vm2, %v45_v26  }
  0x7e   :  { %v74_v28 = vpop.permute.xlu0 %73   ;;  %v82_v29 = vpop.permute.xlu1 %81  }
  0x7f   :  { %136 = vst.msk [vmem:[%s286_s1 + $0x8] sm:$0xff] %vm65_vm3, %v74_v28   ;;  %138 = vst.msk [vmem:[%s286_s1 + $0x10] ss:$8 sm:$0x3] %vm65_vm3, %v82_v29  }
  0x82   :  { %v93_v30 = vpop.permute.xlu0 %92   ;;  %v103_v31 = vpop.permute.xlu1 %102  }
  0x83   :  { %95 = vst.msk [vmem:[%s286_s1] sm:$0xff] %vm94_vm4, %v93_v30   ;;  %143 = vst.msk [vmem:[%s286_s1 + $0x8] sm:$0xff] %vm94_vm4, %v103_v31  }
  0x86   :  { %v111_v32 = vpop.permute.xlu0 %110  }
  0x87   :  { %145 = vst.msk [vmem:[%s286_s1 + $0x10] ss:$8 sm:$0x3] %vm94_vm4, %v111_v32  }

// kernel: tile.59
= control target key start
LH: loop header
LB: loop body
LE: loop exit
PB: predicated region body
PF: predicated region fallthrough
CT: control target
= control target key end

     0   :  { %vm37_vm0 = vcmask 1047556   ;;  %vm48_vm1 = vcmask 1045506   ;;  %vm53_vm2 = vcmask 1047558   ;;  %s63_s6 = smov 3  ;;  %s70_s15 = smov 192  ;;  %vm87_vm3 = vcmask 1043458   ;;  %s290_s0 = inlined_call_operand.vmem [shape: f32[9,8,64], index: 0, kind: input, shape index: {}]   ;;  %s291_s1 = inlined_call_operand.vmem [shape: f32[9,512], index: 1, kind: output, shape index: {}]  }
   0x1   :  { %v127_v0 = vld [vmem:[%s290_s0 + $0x1] ss:$8 sm:$0xf]   ;;  %v134_v3 = vld [vmem:[%s290_s0 + $0x43] ss:$-8 sm:%s63_s6]   ;;  %s149_s16 = smov 64  }
   0x2   :  { %v128_v1 = vld [vmem:[%s290_s0 + $0x1] ss:$8 sm:$0xf0]   ;;  %v135_v4 = vld [vmem:[%s290_s0 - $0xb] ss:$8 sm:$0x3c]  }
   0x3   :  { %v38_v2 = vsel %vm37_vm0, %v128_v1, %v127_v0  ;;  %v68_v5 = vsel %vm48_vm1, %v135_v4, %v134_v3  ;;  %v136_v6 = vld [vmem:[%s290_s0 - $0xb] ss:$8 sm:%s70_s15]   ;;  %s44_s19 = smov 3  ;;  %v130_v7 = vld [vmem:[%s290_s0 - $0x5] ss:$8 sm:$0x3c]  }
   0x4   :  { %39 = vrot.lane.b32.xlu0 %v38_v2, %s149_s16  ;;  %v73_v8 = vsel %vm53_vm2, %v136_v6, %v68_v5  ;;  %v129_v9 = vld [vmem:[%s290_s0 + $0x41] ss:$-62 sm:%s44_s19]   ;;  %s51_s24 = smov 192  ;;  %s82_s25 = smov 3  ;;  %vm3_vm4 = vcmask 523264   ;;  %vm41_vm5 = vcmask 1048064  }
   0x5   :  { %74 = vrot.lane.b32.xlu1 %v73_v8, %s149_s16  ;;  %v49_v10 = vsel %vm48_vm1, %v130_v7, %v129_v9  ;;  %v131_v11 = vld [vmem:[%s290_s0 - $0x5] ss:$8 sm:%s51_s24]   ;;  %s85_s28 = smov 12  ;;  %v141_v12 = vld [vmem:[%s290_s0 - $0x11] ss:$8 sm:$0xf0]  }
   0x6   :  { %v54_v13 = vsel %vm53_vm2, %v131_v11, %v49_v10  ;;  %v139_v14 = vld [vmem:[%s290_s0 + $0x45] ss:$-16 sm:%s82_s25]   ;;  %s101_s6 = smov 3  ;;  %s104_s7 = smov 12  ;;  %v2_v18 = vld [vmem:[%s290_s0] ss:$2 sm:$0xff]  }
   0x7   :  { %v140_v15 = vld [vmem:[%s290_s0 + $0xa9] ss:$-54 sm:%s85_s28]   ;;  %4 = vst.msk [vmem:[%s291_s1] ss:$8 sm:$0xf] %vm3_vm4, %v2_v18  }
   0x8   :  { %55 = vrot.lane.b32.xlu0 %v54_v13, %s149_s16  ;;  %v88_v16 = vsel %vm87_vm3, %v140_v15, %v139_v14  ;;  %v144_v17 = vld [vmem:[%s290_s0 + $0x47] ss:$-24 sm:%s101_s6]   ;;  %115 = vst.msk [vmem:[%s291_s1 - $0x1f] ss:$8 sm:$0xf0] %vm3_vm4, %v2_v18  }
   0x9   :  { %v92_v19 = vsel %vm37_vm0, %v141_v12, %v88_v16  ;;  %v145_v20 = vld [vmem:[%s290_s0 + $0x27] ss:$8 sm:%s104_s7]   ;;  %v116_v21 = vld [vmem:[%s290_s0 + $0x10] ss:$2 sm:$0xff]   ;;  %v119_v22 = vld [vmem:[%s290_s0 + $0x20] ss:$2 sm:$0xff]  }
   0xa   :  { %93 = vrot.lane.b32.xlu1 %v92_v19, %s149_s16  ;;  %v107_v23 = vsel %vm87_vm3, %v145_v20, %v144_v17  ;;  %117 = vst.msk [vmem:[%s291_s1 + $0x2] ss:$8 sm:$0xf] %vm3_vm4, %v116_v21   ;;  %118 = vst.msk [vmem:[%s291_s1 - $0x1d] ss:$8 sm:$0xf0] %vm3_vm4, %v116_v21  }
   0xb   :  { %120 = vst.msk [vmem:[%s291_s1 + $0x4] ss:$8 sm:$0xf] %vm3_vm4, %v119_v22   ;;  %121 = vst.msk [vmem:[%s291_s1 - $0x1b] ss:$8 sm:$0xf0] %vm3_vm4, %v119_v22  }
   0xc   :  { %v122_v24 = vld [vmem:[%s290_s0 + $0x30] ss:$2 sm:$0xff]   ;;  %v125_v25 = vld [vmem:[%s290_s0 + $0x40] ss:$2 sm:$0xf]   ;;  %108 = vrot.lane.b32.xlu0 %v107_v23, %s149_s16 }
   0xd   :  { %123 = vst.msk [vmem:[%s291_s1 + $0x6] ss:$8 sm:$0xf] %vm3_vm4, %v122_v24   ;;  %124 = vst.msk [vmem:[%s291_s1 - $0x19] ss:$8 sm:$0xf0] %vm3_vm4, %v122_v24  }
   0xe   :  { %126 = vst.msk [vmem:[%s291_s1 + $0x20] ss:$8 sm:$0xf] %vm3_vm4, %v125_v25  }
  0x76   :  { %v40_v26 = vpop.permute.xlu0 %39  }
  0x77   :  { %42 = vst.msk [vmem:[%s291_s1] sm:$0xff] %vm41_vm5, %v40_v26   ;;  %v75_v27 = vpop.permute.xlu1 %74  }
  0x78   :  { %137 = vst.msk [vmem:[%s291_s1 + $0x28] ss:$-25 sm:$0x3] %vm41_vm5, %v75_v27   ;;  %138 = vst.msk [vmem:[%s291_s1 + $0xe] sm:$0xfc] %vm41_vm5, %v75_v27  }
  0x7a   :  { %v56_v28 = vpop.permute.xlu0 %55  }
  0x7b   :  { %132 = vst.msk [vmem:[%s291_s1 + $0x20] ss:$-24 sm:$0x3] %vm41_vm5, %v56_v28   ;;  %133 = vst.msk [vmem:[%s291_s1 + $0x7] sm:$0xfc] %vm41_vm5, %v56_v28  }
  0x7c   :  { %v94_v29 = vpop.permute.xlu1 %93  }
  0x7d   :  { %142 = vst.msk [vmem:[%s291_s1 + $0x30] ss:$-26 sm:$0x3] %vm41_vm5, %v94_v29   ;;  %143 = vst.msk [vmem:[%s291_s1 + $0x15] sm:$0xfc] %vm41_vm5, %v94_v29  }
  0x7e   :  { %v109_v30 = vpop.permute.xlu0 %108  }
  0x7f   :  { %146 = vst.msk [vmem:[%s291_s1 + $0x38] ss:$-27 sm:$0x3] %vm41_vm5, %v109_v30   ;;  %147 = vst.msk [vmem:[%s291_s1 + $0x1c] sm:$0xc] %vm41_vm5, %v109_v30  }

// kernel: a_call__.2
= control target key start
LH: loop header
LB: loop body
LE: loop exit
PB: predicated region body
PF: predicated region fallthrough
CT: control target
= control target key end

     0   :  { %s1608_s27 = smov 0   ;;  %s2061_s0 = inlined_call_operand.vmem [shape: bf16[2,36,128], index: 0, kind: input, shape index: {}]   ;;  %s2062_s1 = inlined_call_operand.vmem [shape: f32[36,512], index: 1, kind: input, shape index: {}]   ;;  %s2063_s2 = inlined_call_operand.vmem [shape: bf16[128,512], index: 2, kind: input, shape index: {}]   ;;  %s2064_s3 = inlined_call_operand.vmem [shape: f32[1,512], index: 3, kind: input, shape index: {}]   ;;  %s2065_s4 = inlined_call_operand.vmem [shape: f32[9,256], index: 4, kind: input, shape index: {}]   ;;  %s2066_s5 = inlined_call_operand.vmem [shape: f32[1,256], index: 5, kind: input, shape index: {}]   ;;  %s2067_s6 = inlined_call_operand.vmem [shape: bf16[256,128], index: 6, kind: input, shape index: {}]   ;;  %s2068_s7 = inlined_call_operand.vmem [shape: f32[1,128], index: 7, kind: input, shape index: {}]   ;;  %s2069_s8 = inlined_call_operand.vmem [shape: bf16[2,8,128], index: 8, kind: output, shape index: {}]  }
   0x1 LB: > { %s1368_s28 = sadd.s32 4294967295, %s1558_s27   ;;  %p1372_p0 = scmp.ge.s32.totalorder %s1558_s27, 1  ;;  %s1558_s27 = sphi %s1608_s27, %s18_s27  }
   0x2   : > { %p262_p1 = scmp.lt.s32.totalorder %s1558_s27, 3 }
   0x4   : > { %p263_p2 = pnand %p1372_p0, %p262_p1 }
   0x5   : > { %v1485_v0 = vld [vmem:[%s2063_s2 + $0x4] ss:$16 sps:$4 sm:$0xff] (!%p263_p2)   ;;  %v1487_v1 = vld [vmem:[%s2063_s2 + $0xc] ss:$16 sps:$4 sm:$0xff] (!%p263_p2)   ;;  %v1560_v2 = vmov (!%p263_p2), 0   ;;  %p295_p3 = scmp.lt.s32.totalorder (!%p263_p2), %s1368_s28, 1  ;;  %v344_v16 = vlaneseq (!%p263_p2) }
   0x6   : > { %266 = sbr.rel (%p263_p2) target bundleno = 640 (0x280), region = 52  ;;  %572 = vmatprep.mubr.bf16.mxu0 (!%p263_p2), %v1560_v2  ;;  %633 = vmatprep.mubr.bf16.mxu1 (!%p263_p2), %v1560_v2  ;;  %v1489_v3 = vld [vmem:[%s2063_s2] ss:$16 sps:$4 sm:$0xff] (!%p263_p2)   ;;  %v1490_v4 = vld [vmem:[%s2063_s2 + $0x8] ss:$16 sps:$4 sm:$0xff] (!%p263_p2)   ;;  %s1561_s19 = smov (!%p263_p2), 32  }
   0x7   : > { %540 = vmatprep.subr.bf16.mxu0 (!%p263_p2), %v1485_v0  ;;  %601 = vmatprep.subr.bf16.mxu1 (!%p263_p2), %v1487_v1  ;;  %v1491_v5 = vld [vmem:[%s2063_s2 + $0x24] ss:$16 sps:$4 sm:$0xff] (!%p263_p2)   ;;  %v1493_v6 = vld [vmem:[%s2063_s2 + $0x2c] ss:$16 sps:$4 sm:$0xff] (!%p263_p2)   ;;  %v1495_v7 = vld [vmem:[%s2063_s2 + $0x20] ss:$16 sps:$4 sm:$0xff] (!%p263_p2)  }
   0x8   : > { %541 = vmatpush1.bf16.msra.mxu0 (!%p263_p2), %v1489_v3  ;;  %602 = vmatpush1.bf16.msra.mxu1 (!%p263_p2), %v1490_v4  ;;  %v1496_v8 = vld [vmem:[%s2063_s2 + $0x28] ss:$16 sps:$4 sm:$0xff] (!%p263_p2)   ;;  %v1497_v9 = vld [vmem:[%s2063_s2 + $0x44] ss:$16 sps:$4 sm:$0xff] (!%p263_p2)   ;;  %v1499_v10 = vld [vmem:[%s2063_s2 + $0x4c] ss:$16 sps:$4 sm:$0xff] (!%p263_p2)  }
   0x9   : > { %542 = vmatprep.subr.bf16.mxu0 (!%p263_p2), %v1491_v5  ;;  %603 = vmatprep.subr.bf16.mxu1 (!%p263_p2), %v1493_v6  ;;  %v1501_v11 = vld [vmem:[%s2063_s2 + $0x40] ss:$16 sps:$4 sm:$0xff] (!%p263_p2)   ;;  %v1502_v12 = vld [vmem:[%s2063_s2 + $0x48] ss:$16 sps:$4 sm:$0xff] (!%p263_p2)   ;;  %v1503_v13 = vld [vmem:[%s2063_s2 + $0x64] ss:$16 sps:$4 sm:$0xff] (!%p263_p2)  }
   0xa   : > { %v1505_v14 = vld [vmem:[%s2063_s2 + $0x6c] ss:$16 sps:$4 sm:$0xff] (!%p263_p2)   ;;  %v1507_v15 = vld [vmem:[%s2063_s2 + $0x60] ss:$16 sps:$4 sm:$0xff] (!%p263_p2)   ;;  %v1508_v17 = vld [vmem:[%s2063_s2 + $0x68] ss:$16 sps:$4 sm:$0xff] (!%p263_p2)  }
   0xb   : > { %v1509_v18 = vld [vmem:[%s2063_s2 + $0x84] ss:$16 sps:$4 sm:$0xff] (!%p263_p2)   ;;  %v1511_v19 = vld [vmem:[%s2063_s2 + $0x8c] ss:$16 sps:$4 sm:$0xff] (!%p263_p2)   ;;  %v1513_v20 = vld [vmem:[%s2063_s2 + $0x80] ss:$16 sps:$4 sm:$0xff] (!%p263_p2)  }
   0xc   : > { %543 = vmatpush1.bf16.msra.mxu0 (!%p263_p2), %v1495_v7  ;;  %604 = vmatpush1.bf16.msra.mxu1 (!%p263_p2), %v1496_v8  ;;  %v1514_v21 = vld [vmem:[%s2063_s2 + $0x88] ss:$16 sps:$4 sm:$0xff] (!%p263_p2)   ;;  %v1684_v22 = vshrl.u32 (!%p263_p2), %v344_v16, 7  ;;  %v1515_v23 = vld [vmem:[%s2063_s2 + $0xa4] ss:$16 sps:$4 sm:$0xff] (!%p263_p2)   ;;  %vm864_vm0 = vcmask (!%p263_p2), 261120  }
   0xd   : > { %544 = vmatprep.subr.bf16.mxu0 %v1497_v9  ;;  %605 = vmatprep.subr.bf16.mxu1 %v1499_v10  ;;  %s2071_s28 = smov (!%p295_p3, %s1368_s28), 1  ;;  %v1517_v24 = vld [vmem:[%s2063_s2 + $0xac] ss:$16 sps:$4 sm:$0xff]   ;;  %v1519_v25 = vld [vmem:[%s2063_s2 + $0xa0] ss:$16 sps:$4 sm:$0xff]   ;;  %s1562_s12 = smov 96  }
   0xe   : > { %s1473_s9 = smul.u32 20, %s2071_s28  ;;  %v960_v26 = vsub.s32 5, %v1684_v22  ;;  %v1520_v27 = vld [vmem:[%s2063_s2 + $0xa8] ss:$16 sps:$4 sm:$0xff]   ;;  %v1521_v28 = vld [vmem:[%s2063_s2 + $0xc4] ss:$16 sps:$4 sm:$0xff]  }
   0xf   : > { %v354_v29 = vsub.s32 2, %v1684_v22  ;;  %v1523_v30 = vld [vmem:[%s2063_s2 + $0xcc] ss:$16 sps:$4 sm:$0xff]   ;;  %v1525_v31 = vld [vmem:[%s2063_s2 + $0xc0] ss:$16 sps:$4 sm:$0xff]   ;;  %v1758_v48 = vsub.s32 0, %v1684_v22 }
  0x10   : > { %545 = vmatpush1.bf16.msra.mxu0 %v1501_v11  ;;  %606 = vmatpush1.bf16.msra.mxu1 %v1502_v12  ;;  %s1706_s20 = scalar_lea.vmem %s2061_s0, %s1473_s9  ;;  %v1526_v32 = vld [vmem:[%s2063_s2 + $0xc8] ss:$16 sps:$4 sm:$0xff]   ;;  %v1721_v33 = vld [vmem:[%s2065_s4] sm:$0xff]  ;;  %v1529_v36 = vld [vmem:[%s2063_s2 + $0xec] ss:$16 sps:$4 sm:$0xff]   ;;  %v1764_v50 = vsub.s32 1, %v1684_v22 }
  0x11   : > { %546 = vmatprep.subr.bf16.mxu0 %v1503_v13  ;;  %607 = vmatprep.subr.bf16.mxu1 %v1505_v14  ;;  %v1726_v34 = vld [vmem:[%s2065_s4 + $0x8] sm:$0xff]  ;;  %v1527_v35 = vld [vmem:[%s2063_s2 + $0xe4] ss:$16 sps:$4 sm:$0xff]   ;;  %v961_v37 = vrot.slane %v1721_v33, %v960_v26  ;;  %v853_v38 = vrot.slane %v1721_v33, %v354_v29  ;;  %v1531_v39 = vld [vmem:[%s2063_s2 + $0xe0] ss:$16 sps:$4 sm:$0xff]   ;;  %v1767_v51 = vsub.s32 3, %v1684_v22 }
  0x12   : > { %v1532_v40 = vld [vmem:[%s2063_s2 + $0xe8] ss:$16 sps:$4 sm:$0xff]   ;;  %v965_v41 = vrot.slane %v1726_v34, %v960_v26  ;;  %v857_v42 = vrot.slane %v1726_v34, %v354_v29  ;;  %v1533_v43 = vld [vmem:[%s1706_s20] sm:$0xff]   ;;  %v1420_v45 = vld [vmem:[%s2065_s4 + $0x10] ss:$0 sm:$0xff]  ;;  %vm910_vm1 = vcmask 1045504  }
  0x13   : > { %968 = vrot.lane.b32.xlu1 %v961_v37, %s1561_s19  ;;  %860 = vrot.lane.b32.xlu0 %v853_v38, %s1561_s19  ;;  %v1421_v44 = vld [vmem:[%s2065_s4 + $0x18] ss:$0 sm:$0xff]  ;;  %v1534_v46 = vld [vmem:[%s1706_s20 + $0x8] sm:$0xff]   ;;  %vm837_vm2 = vcmask 1046528   ;;  %vm881_vm3 = vcmask 785408   ;;  %vm943_vm4 = vcmask 1044480  }
  0x14   : > { %547 = vmatpush1.bf16.msra.mxu0 %v1507_v15  ;;  %608 = vmatpush1.bf16.msra.mxu1 %v1508_v17  ;;  %v1535_v47 = vld [vmem:[%s1706_s20 + $0x10] ss:$0 sps:$4 sm:$0x33]   ;;  %v342_v49 = vld [vmem:[%s2064_s3] sm:$0xf]  ;;  %v683_v6 = vld [vmem:[%s2062_s1 + $0x8] sm:$0xff] }
  0x15   : > { %548 = vmatprep.subr.bf16.mxu0 %v1509_v18  ;;  %609 = vmatprep.subr.bf16.mxu1 %v1511_v19  ;;  %v1769_v52 = vrot.slane %v342_v49, %v354_v29  ;;  %v1772_v53 = vrot.slane %v342_v49, %v1758_v48  ;;  %v1775_v54 = vrot.slane %v342_v49, %v1764_v50  ;;  %v682_v62 = vld [vmem:[%s2062_s1] sm:$0xff]  ;;  %v684_v63 = vld [vmem:[%s2062_s1 + $0x10] sm:$0xff]  ;;  %v685_v7 = vld [vmem:[%s2062_s1 + $0x18] sm:$0xff] }
  0x16   : > { %v1778_v55 = vrot.slane %v342_v49, %v1767_v51  ;;  %v686_v14 = vld [vmem:[%s2062_s1 + $0x20] sm:$0xff]  ;;  %v688_v15 = vld [vmem:[%s2062_s1 + $0x30] sm:$0xff] }
  0x17   : > { %970 = vrot.lane.b32.xlu1 %v965_v41, %s1561_s19  ;;  %862 = vrot.lane.b32.xlu0 %v857_v42, %s1561_s19  ;;  %v692_v49 = vld [vmem:[%s2062_s1 + $0x50] sm:$0xff] }
  0x18   : > { %549 = vmatpush1.bf16.msra.mxu0 %v1513_v20  ;;  %610 = vmatpush1.bf16.msra.mxu1 %v1514_v21 }
  0x19   : > { %550 = vmatprep.subr.bf16.mxu0 %v1515_v23  ;;  %611 = vmatprep.subr.bf16.mxu1 %v1517_v24  ;;  %v687_v23 = vld [vmem:[%s2062_s1 + $0x28] sm:$0xff]  ;;  %v689_v24 = vld [vmem:[%s2062_s1 + $0x38] sm:$0xff] }
  0x1b   : > { %1081 = vrot.lane.b32.xlu1 %v1421_v44, %s1561_s19  ;;  %1079 = vrot.lane.b32.xlu0 %v1420_v45, %s1561_s19  ;;  %s1374_s19 = sshll.u32 %s2071_s28, 2 }
  0x1c   : > { %551 = vmatpush1.bf16.msra.mxu0 %v1519_v25  ;;  %612 = vmatpush1.bf16.msra.mxu1 %v1520_v27  ;;  %s303_s23 = scalar_lea.vmem %s2069_s8, %s1374_s19 }
  0x1d   : > { %552 = vmatprep.subr.bf16.mxu0 %v1521_v28  ;;  %613 = vmatprep.subr.bf16.mxu1 %v1523_v30 }
  0x20   : > { %553 = vmatpush1.bf16.msra.mxu0 %v1525_v31  ;;  %614 = vmatpush1.bf16.msra.mxu1 %v1526_v32 }
  0x21   : > { %554 = vmatprep.subr.bf16.mxu0 %v1527_v35  ;;  %615 = vmatprep.subr.bf16.mxu1 %v1529_v36 }
  0x24   : > { %555 = vmatpush1.bf16.msra.mxu0 %v1531_v39  ;;  %616 = vmatpush1.bf16.msra.mxu1 %v1532_v40 }
  0x27   : > { %573 = vmatmul.mubr.bf16.vlgmr.msra.gmra.mrb[0].mxu0 %v1533_v43  ;;  %634 = vmatmul.mubr.bf16.vlgmr.msra.gmra.mrb[0].mxu1 %v1533_v43 }
  0x28   : > { %582 = vmatprep.mubr.bf16.mxu0 %v1560_v2  ;;  %643 = vmatprep.mubr.bf16.mxu1 %v1560_v2 }
  0x2f   : > { %583 = vmatmul.mubr.bf16.gmra.mrb[4].mxu0 %v1534_v46  ;;  %644 = vmatmul.mubr.bf16.gmra.mrb[4].mxu1 %v1534_v46 }
  0x30   : > { %592 = vmatprep.mubr.bf16.mxu0 %v1560_v2  ;;  %653 = vmatprep.mubr.bf16.mxu1 %v1560_v2 }
  0x37   : > { %593 = vmatmul.mubr.bf16.gmra.mrb[8].mxu0 %v1535_v47  ;;  %654 = vmatmul.mubr.bf16.gmra.mrb[8].mxu1 %v1535_v47  ;;  %v690_v47 = vld [vmem:[%s2062_s1 + $0x40] sm:$0xff] }
  0x85   : > { %v1812_v29 = vpop.permute.xlu0 %860  ;;  %v1814_v32 = vpop.permute.xlu1 %968 }
  0xfa   : > { %v574_v56 = vpop.f32.mrb[0].mxu0  ;;  %v635_v57 = vpop.f32.mrb[0].mxu1 }
  0xfb   : > { %v575_v58 = vadd.f32 %v574_v56, %v1772_v53  ;;  %v636_v59 = vadd.f32 %v635_v57, %v1769_v52  ;;  %v576_v60 = vpop.f32.mrb[1].mxu0  ;;  %v637_v61 = vpop.f32.mrb[1].mxu1  ;;  %v691_v57 = vld [vmem:[%s2062_s1 + $0x48] sm:$0xff] }
  0xfc   : > { %v577_v0 = vadd.f32 %v576_v60, %v1775_v54  ;;  %v638_v1 = vadd.f32 %v637_v61, %v1778_v55  ;;  %v578_v2 = vpop.f32.mrb[2].mxu0  ;;  %v639_v3 = vpop.f32.mrb[2].mxu1 }
  0xfd   : > { %v662_v4 = vmax.f32 %v575_v58, 0.0  ;;  %v664_v5 = vmax.f32 %v636_v59, 0.0  ;;  %v579_v8 = vadd.f32 %v578_v2, %v1772_v53  ;;  %v640_v9 = vadd.f32 %v639_v3, %v1769_v52  ;;  %v580_v10 = vpop.f32.mrb[3].mxu0  ;;  %v641_v11 = vpop.f32.mrb[3].mxu1 }
  0xfe   : > { %v663_v12 = vmax.f32 %v577_v0, 0.0  ;;  %v665_v13 = vmax.f32 %v638_v1, 0.0  ;;  %v581_v16 = vadd.f32 %v580_v10, %v1775_v54  ;;  %v642_v17 = vadd.f32 %v641_v11, %v1778_v55  ;;  %v1536_v10 = vld [vmem:[%s2067_s6 + $0x40] sm:$0xff]  }
  0xff   : > { %v702_v18 = vmul.f32 %v682_v62, %v662_v4  ;;  %v704_v19 = vmul.f32 %v684_v63, %v664_v5  ;;  %v666_v20 = vmax.f32 %v579_v8, 0.0  ;;  %v668_v21 = vmax.f32 %v640_v9, 0.0  ;;  %v693_v63 = vld [vmem:[%s2062_s1 + $0x58] sm:$0xff]  ;;  %v863_v9 = vpop.permute.xlu0 %862  ;;  %v1537_v11 = vld [vmem:[%s2067_s6] sm:$0xff]   ;;  %1451 = vmatprep.subr.bf16.mxu0 %v1536_v10 }
 0x100   : > { %v703_v25 = vmul.f32 %v683_v6, %v663_v12  ;;  %v705_v26 = vmul.f32 %v685_v7, %v665_v13  ;;  %v667_v27 = vmax.f32 %v581_v16, 0.0  ;;  %v669_v28 = vmax.f32 %v642_v17, 0.0  ;;  %v694_v6 = vld [vmem:[%s2062_s1 + $0x60] sm:$0xff]  ;;  %v1851_v16 = vpop.permute.xlu1 %970  ;;  %v1538_v17 = vld [vmem:[%s2067_s6 + $0x48] sm:$0xff]   ;;  %1452 = vmatpush3.bf16.msra.mxu0 %v1537_v11 }
 0x101   : > { %v706_v30 = vmul.f32 %v686_v14, %v666_v20  ;;  %v708_v31 = vmul.f32 %v688_v15, %v668_v21  ;;  %v1014_v3 = vsub.s32 6, %v1684_v22  ;;  %v695_v15 = vld [vmem:[%s2062_s1 + $0x68] sm:$0xff]  ;;  %v696_v21 = vld [vmem:[%s2062_s1 + $0x70] sm:$0xff]  ;;  %1453 = vmatprep.subr.bf16.mxu0 %v1538_v17 }
 0x102   : > { %v1441_v35 = vpack.c.bf16 %v703_v25, %v702_v18  ;;  %v1442_v36 = vpack.c.bf16 %v705_v26, %v704_v19  ;;  %v707_v37 = vmul.f32 %v687_v23, %v667_v27  ;;  %v709_v38 = vmul.f32 %v689_v24, %v669_v28  ;;  %v584_v39 = vpop.f32.mrb[4].mxu0  ;;  %v645_v40 = vpop.f32.mrb[4].mxu1  ;;  %v1539_v28 = vld [vmem:[%s2067_s6 + $0x8] sm:$0xff]  }
 0x103   : > { %v585_v41 = vadd.f32 %v584_v39, %v1772_v53  ;;  %v646_v42 = vadd.f32 %v645_v40, %v1769_v52  ;;  %v586_v43 = vpop.f32.mrb[5].mxu0  ;;  %v647_v44 = vpop.f32.mrb[5].mxu1  ;;  %v1865_v27 = vrot.slane %v1721_v33, %v1014_v3  ;;  %v1540_v39 = vld [vmem:[%s2067_s6 + $0x50] sm:$0xff]  }
 0x104   : > { %787 = vst [vmem:[#allocation2 + $0x8] sm:$0xff] %v1442_v36  ;;  %v1818_v45 = vpack.c.bf16 %v707_v37, %v706_v30  ;;  %v1444_v46 = vpack.c.bf16 %v709_v38, %v708_v31  ;;  %v587_v56 = vadd.f32 %v586_v43, %v1775_v54  ;;  %v648_v58 = vadd.f32 %v647_v44, %v1778_v55  ;;  %v588_v59 = vpop.f32.mrb[6].mxu0  ;;  %v649_v60 = vpop.f32.mrb[6].mxu1  ;;  %v697_v38 = vld [vmem:[%s2062_s1 + $0x78] sm:$0xff] }
 0x105   : > { %v670_v61 = vmax.f32 %v585_v41, 0.0  ;;  %v672_v62 = vmax.f32 %v646_v42, 0.0  ;;  %v589_v0 = vadd.f32 %v588_v59, %v1772_v53  ;;  %v590_v1 = vpop.f32.mrb[7].mxu0  ;;  %v651_v2 = vpop.f32.mrb[7].mxu1  ;;  %v650_v7 = vadd.f32 %v649_v60, %v1769_v52  ;;  %1454 = vmatpush3.bf16.msra.mxu0 %v1539_v28 }
 0x106   : > { %788 = vst [vmem:[#allocation2 + $0x10] sm:$0xff] %v1818_v45  ;;  %789 = vst [vmem:[#allocation2 + $0x18] sm:$0xff] %v1444_v46  ;;  %v671_v4 = vmax.f32 %v587_v56, 0.0  ;;  %v673_v5 = vmax.f32 %v648_v58, 0.0  ;;  %v591_v8 = vadd.f32 %v590_v1, %v1775_v54  ;;  %v865_v52 = vsel %vm864_vm0, %v1812_v29, %v863_v9  ;;  %1455 = vmatprep.subr.bf16.mxu0 %v1540_v39 }
 0x107   : > { %v710_v12 = vmul.f32 %v690_v47, %v670_v61  ;;  %v712_v13 = vmul.f32 %v692_v49, %v672_v62  ;;  %v674_v14 = vmax.f32 %v589_v0, 0.0  ;;  %v676_v20 = vmax.f32 %v650_v7, 0.0  ;;  %v698_v49 = vld [vmem:[%s2062_s1 + $0x80] sm:$0xf]  ;;  %v1082_v61 = vpop.permute.xlu1 %1081  ;;  %v1541_v7 = vld [vmem:[%s2067_s6 + $0x10] sm:$0xff]  }
 0x108   : > { %v711_v18 = vmul.f32 %v691_v57, %v671_v4  ;;  %v713_v19 = vmul.f32 %v693_v63, %v673_v5  ;;  %v675_v23 = vmax.f32 %v591_v8, 0.0  ;;  %v652_v25 = vadd.f32 %v651_v2, %v1778_v55  ;;  %v699_v57 = vld [vmem:[%s2062_s1 + $0x88] sm:$0xf]  ;;  %v1080_v63 = vpop.permute.xlu0 %1079 }
 0x109   : > { %v714_v24 = vmul.f32 %v694_v6, %v674_v14  ;;  %v1862_v26 = vunpack.c.h.bf16 %v1441_v35  ;;  %v1870_v36 = vunpack.c.l.bf16 %v1441_v35  ;;  %v716_v40 = vmul.f32 %v696_v21, %v676_v20  ;;  %1456 = vmatpush3.bf16.msra.mxu0 %v1541_v7 }
 0x10a   : > { %v1445_v30 = vpack.c.bf16 %v711_v18, %v710_v12  ;;  %v1446_v31 = vpack.c.bf16 %v713_v19, %v712_v13  ;;  %v715_v37 = vmul.f32 %v695_v15, %v675_v23  ;;  %v594_v55 = vpop.f32.mrb[8].mxu0  ;;  %v677_v41 = vmax.f32 %v652_v25, 0.0  ;;  %v1542_v13 = vld [vmem:[%s2067_s6 + $0x58] sm:$0xff]  }
 0x10b   : > { %v848_v42 = vld [vmem:[#allocation2 + $0x8] sm:$0xf]  ;;  %v870_v43 = vmul.f32 %v865_v52, %v1862_v26  ;;  %v595_v44 = vadd.f32 %v594_v55, %v1772_v53  ;;  %v596_v35 = vpop.f32.mrb[9].mxu0  ;;  %v1888_v58 = vrot.slane %v1726_v34, %v1014_v3  ;;  %v818_v1 = vunpack.c.h.bf16 %v1818_v45  ;;  %1457 = vmatprep.subr.bf16.mxu0 %v1542_v13 }
 0x10c   : > { %790 = vst [vmem:[#allocation2 + $0x20] sm:$0xff] %v1445_v30  ;;  %791 = vst [vmem:[#allocation2 + $0x28] sm:$0xff] %v1446_v31  ;;  %v1447_v46 = vpack.c.bf16 %v715_v37, %v714_v24  ;;  %v849_v47 = vunpack.c.l.bf16 %v848_v42  ;;  %v597_v56 = vadd.f32 %v596_v35, %v1775_v54  ;;  %v598_v59 = vpop.f32.mrb[10].mxu0  ;;  %v717_v53 = vmul.f32 %v697_v38, %v677_v41 }
 0x10d   : > { %v678_v60 = vmax.f32 %v595_v44, 0.0  ;;  %v1067_v62 = vld [vmem:[#allocation2 + $0x18] sm:$0x1]  ;;  %v1009_v0 = vld [vmem:[#allocation2 + $0x10] sm:$0x11]  ;;  %877 = vrot.lane.b32.xlu0 %v870_v43, %s1562_s12  ;;  %v1894_v54 = vrot.slane %v1726_v34, %v1764_v50  ;;  %v869_v2 = vmul.f32 %v1812_v29, %v1870_v36  ;;  %v599_v6 = vpop.f32.mrb[11].mxu0  ;;  %v1083_v29 = vsel %vm864_vm0, %v1080_v63, %v1082_v61 }
 0x10e   : > { %792 = vst [vmem:[#allocation2 + $0x30] sm:$0xff] %v1447_v46  ;;  %v871_v3 = vmul.f32 %v863_v9, %v849_v47  ;;  %v679_v4 = vmax.f32 %v597_v56, 0.0  ;;  %v1068_v5 = vunpack.c.l.bf16 %v1067_v62  ;;  %v1448_v8 = vpack.c.bf16 %v717_v53, %v716_v40  ;;  %v1543_v59 = vld [vmem:[%s2067_s6 + $0x18] sm:$0xff]   ;;  %v1544_v53 = vld [vmem:[%s2067_s6 + $0x60] sm:$0xff]  }
 0x10f   : > { %v718_v10 = vmul.f32 %v698_v49, %v678_v60  ;;  %v1010_v11 = vunpack.c.l.bf16 %v1009_v0  ;;  %v1011_v12 = vunpack.c.h.bf16 %v1009_v0  ;;  %v810_v9 = vrot.slane %v1726_v34, %v1758_v48  ;;  %1458 = vmatpush3.bf16.msra.mxu0 %v1543_v59 }
 0x110   : > { %v719_v14 = vmul.f32 %v699_v57, %v679_v4  ;;  %879 = vrot.lane.b32.xlu1 %v871_v3, %s1562_s12  ;;  %v806_v15 = vrot.slane %v1721_v33, %v1758_v48  ;;  %v897_v52 = vrot.slane %v1721_v33, %v1767_v51  ;;  %793 = vst [vmem:[#allocation2 + $0x38] sm:$0xff] %v1448_v8  ;;  %v817_v57 = vunpack.c.l.bf16 %v1818_v45  ;;  %v1545_v4 = vld [vmem:[%s2067_s6 + $0x20] sm:$0xff]  }
 0x111   : > { %v1913_v17 = vmul.f32 %v1888_v58, %v1011_v12  ;;  %875 = vrot.lane.b32.xlu0 %v869_v2, %s1562_s12  ;;  %v1917_v18 = vmul.f32 %v1894_v54, %v818_v1  ;;  %v824_v19 = vrot.slane %v1721_v33, %v1764_v50  ;;  %v901_v20 = vrot.slane %v1726_v34, %v1767_v51 }
 0x112   : > { %v972_v21 = vsel %vm864_vm0, %v1814_v32, %v1851_v16  ;;  %v1449_v23 = vpack.c.bf16 %v719_v14, %v718_v10  ;;  %v1927_v24 = vmul.f32 %v1080_v63, %v1870_v36  ;;  %v1929_v30 = vmul.f32 %v1082_v61, %v849_v47  ;;  %1459 = vmatprep.subr.bf16.mxu0 %v1544_v53  ;;  %v1546_v10 = vld [vmem:[%s2067_s6 + $0x68] sm:$0xff]  }
 0x113   : > { %v888_v25 = vld [vmem:[#allocation2 + $0x20] sm:$0xee]  ;;  %v954_v28 = vld [vmem:[#allocation2 + $0x28] sm:$0xe]  ;;  %v1931_v31 = vmul.f32 %v1082_v61, %v1068_v5  ;;  %v1934_v37 = vmul.f32 %v1865_v27, %v1010_v11  ;;  %v1937_v51 = vmul.f32 %v1083_v29, %v1862_v26  ;;  %v1939_v40 = vmul.f32 %v1080_v63, %v1010_v11  ;;  %v1941_v41 = vld [vmem:[#allocation2 + $0x20] sm:$0x11]  ;;  %1460 = vmatpush3.bf16.msra.mxu0 %v1545_v4 }
 0x114   : > { %v890_v38 = vunpack.c.l.bf16 %v888_v25  ;;  %v891_v55 = vunpack.c.h.bf16 %v888_v25  ;;  %v956_v39 = vunpack.c.l.bf16 %v954_v28  ;;  %794 = vst [vmem:[#allocation2 + $0x40] sm:$0x33] %v1449_v23  ;;  %v1032_v43 = vrot.slane %v1913_v17, 1  ;;  %1461 = vmatprep.subr.bf16.mxu0 %v1546_v10  ;;  %v1550_v17 = vld [vmem:[%s2067_s6 + $0x78] sm:$0xff]  }
 0x115   : > { %v889_v42 = vld [vmem:[#allocation2 + $0x30] sm:$0x11]  ;;  %v1944_v44 = vmul.f32 %v1083_v29, %v1011_v12  ;;  %v841_v35 = vrot.slane %v1917_v18, 1  ;;  %v812_v46 = vmul.f32 %v810_v9, %v1862_v26  ;;  %v820_v63 = vunpack.c.h.bf16 %v1941_v41 }
 0x116   : > { %v902_v47 = vmul.f32 %v897_v52, %v890_v38  ;;  %v892_v49 = vunpack.c.l.bf16 %v889_v42  ;;  %v893_v56 = vunpack.c.h.bf16 %v889_v42  ;;  %v903_v60 = vmul.f32 %v901_v20, %v891_v55 }
 0x117   : > { %v977_v61 = vmul.f32 %v972_v21, %v891_v55  ;;  %v978_v62 = vmul.f32 %v1851_v16, %v956_v39  ;;  %v955_v2 = vld [vmem:[#allocation2 + $0x38] sm:$0x1]  ;;  %v819_v3 = vunpack.c.l.bf16 %v1941_v41  ;;  %v811_v45 = vmul.f32 %v806_v15, %v1870_v36 }
 0x118   : > { %v904_v0 = vmul.f32 %v897_v52, %v892_v49  ;;  %v905_v1 = vmul.f32 %v901_v20, %v893_v56  ;;  %v976_v5 = vmul.f32 %v1814_v32, %v890_v38  ;;  %v914_v6 = vrot.slane %v903_v60, 2 }
 0x119   : > { %v957_v7 = vunpack.c.l.bf16 %v955_v2  ;;  %v980_v8 = vmul.f32 %v972_v21, %v893_v56  ;;  %v991_v12 = vrot.slane %v977_v61, 2  ;;  %v994_v13 = vrot.slane %v978_v62, 2 }
 0x11a   : > { %v915_v11 = vrot.slane %v905_v1, 2  ;;  %v979_v14 = vmul.f32 %v1814_v32, %v892_v49  ;;  %v832_v15 = vmul.f32 %v1894_v54, %v820_v63  ;;  %v829_v52 = vmul.f32 %v824_v19, %v817_v57 }
 0x11b   : > { %v981_v29 = vmul.f32 %v1851_v16, %v957_v7  ;;  %v992_v9 = vrot.slane %v980_v8, 2  ;;  %v911_v18 = vrot.slane %v902_v47, 2  ;;  %v831_v21 = vmul.f32 %v824_v19, %v819_v3  ;;  %v922_v7 = vld [vmem:[#allocation2 + $0x40] sm:$0x33] }
 0x11c   : > { %v1972_v20 = vsel %vm910_vm1, %v914_v6, %v915_v11  ;;  %v912_v23 = vrot.slane %v904_v0, 2  ;;  %v989_v28 = vrot.slane %v979_v14, 2  ;;  %v842_v16 = vrot.slane %v832_v15, 1  ;;  %v921_v14 = vld [vmem:[#allocation2 + $0x30] sm:$0xee] }
 0x11d   : > { %v995_v25 = vrot.slane %v981_v29, 2  ;;  %v993_v32 = vsel %vm910_vm1, %v991_v12, %v992_v9  ;;  %v1103_v38 = vrot.slane %v1944_v44, 1  ;;  %v838_v54 = vrot.slane %v829_v52, 1 }
 0x11e   : > { %999 = vrot.lane.b32.xlu1 %v993_v32, %s1562_s12  ;;  %v839_v55 = vrot.slane %v831_v21, 1  ;;  %v913_v39 = vsel %vm910_vm1, %v911_v18, %v912_v23  ;;  %v988_v42 = vrot.slane %v976_v5, 2  ;;  %v843_v19 = vsel %vm837_vm2, %v841_v35, %v842_v16 }
 0x11f   : > { %v996_v47 = vsel %vm910_vm1, %v994_v13, %v995_v25  ;;  %v1021_v49 = vmul.f32 %v1888_v58, %v1862_v26  ;;  %v1105_v56 = vrot.slane %v1929_v30, 1  ;;  %v1102_v57 = vrot.slane %v1937_v51, 1  ;;  %v1547_v58 = vld [vmem:[%s2067_s6 + $0x28] sm:$0xff]   ;;  %v1548_v30 = vld [vmem:[%s2067_s6 + $0x70] sm:$0xff]  }
 0x120   : > { %1001 = vrot.lane.b32.xlu0 %v996_v47, %s1562_s12  ;;  %v847_v44 = vadd.f32 %v843_v19, %v812_v46  ;;  %v840_v59 = vsel %vm837_vm2, %v838_v54, %v839_v55  ;;  %v1106_v53 = vrot.slane %v1931_v31, 1  ;;  %v990_v60 = vsel %vm910_vm1, %v988_v42, %v989_v28  ;;  %1462 = vmatpush3.bf16.msra.mxu0 %v1547_v58  ;;  %v655_v46 = vpop.f32.mrb[8].mxu1 }
 0x121   : > { %v846_v61 = vadd.f32 %v840_v59, %v811_v45  ;;  %v1031_v62 = vrot.slane %v1021_v49, 1  ;;  %v1029_v35 = vrot.slane %v1934_v37, 1  ;;  %v1020_v26 = vmul.f32 %v1865_v27, %v1870_v36  ;;  %v1549_v36 = vld [vmem:[%s2067_s6 + $0x30] sm:$0xff]   ;;  %1463 = vmatprep.subr.bf16.mxu0 %v1548_v30 }
 0x122   : > { %997 = vrot.lane.b32.xlu1 %v990_v60, %s1562_s12  ;;  %v1100_v31 = vrot.slane %v1939_v40, 1  ;;  %v1104_v51 = vsel %vm837_vm2, %v1102_v57, %v1103_v38  ;;  %v1099_v0 = vrot.slane %v1927_v24, 1  ;;  %v1107_v40 = vsel %vm837_vm2, %v1105_v56, %v1106_v53  ;;  %v1551_v24 = vld [vmem:[%s2067_s6 + $0x38] sm:$0xff]   ;;  %v1038_v38 = vld [vmem:[#allocation2 + $0x10] sm:$0xee] }
 0x123   : > { %v2005_v37 = vsel %vm837_vm2, %v1031_v62, %v1032_v43  ;;  %v1028_v27 = vrot.slane %v1020_v26, 1  ;;  %v657_v43 = vpop.f32.mrb[9].mxu1  ;;  %v929_v11 = vsub.s32 4, %v1684_v22  ;;  %v926_v9 = vunpack.c.h.bf16 %v922_v7 }
 0x124   : > { %1110 = vrot.lane.b32.xlu0 %v1104_v51, %s1562_s12  ;;  %v659_v2 = vpop.f32.mrb[10].mxu1  ;;  %v1101_v45 = vsel %vm837_vm2, %v1099_v0, %v1100_v31  ;;  %1464 = vmatpush3.bf16.msra.mxu0 %v1549_v36  ;;  %v924_v18 = vunpack.c.h.bf16 %v921_v14  ;;  %v925_v23 = vunpack.c.l.bf16 %v922_v7  ;;  %v923_v32 = vunpack.c.l.bf16 %v921_v14 }
 0x125   : > { %v2018_v1 = vsel %vm837_vm2, %v1028_v27, %v1029_v35  ;;  %v660_v4 = vpop.f32.mrb[11].mxu1  ;;  %1465 = vmatprep.subr.bf16.mxu0 %v1550_v17  ;;  %v934_v21 = vrot.slane %v1726_v34, %v929_v11  ;;  %v930_v28 = vrot.slane %v1721_v33, %v929_v11  ;;  %v1043_v16 = vsub.s32 7, %v1684_v22  ;;  %v1120_v27 = vld [vmem:[%s2066_s5] sm:$0x3] }
 0x126   : > { %1112 = vrot.lane.b32.xlu1 %v1107_v40, %s1562_s12  ;;  %v1040_v49 = vunpack.c.h.bf16 %v1038_v38  ;;  %v1129_v2 = vrot.slane %v1120_v27, %v1764_v50  ;;  %v1125_v7 = vrot.slane %v1120_v27, %v1758_v48 }
 0x127   : > { %v938_v25 = vmul.f32 %v934_v21, %v926_v9  ;;  %v936_v54 = vmul.f32 %v934_v21, %v924_v18  ;;  %v937_v55 = vmul.f32 %v930_v28, %v925_v23  ;;  %v935_v47 = vmul.f32 %v930_v28, %v923_v32 }
 0x128   : > { %1108 = vrot.lane.b32.xlu0 %v1101_v45, %s1562_s12  ;;  %1466 = vmatpush3.bf16.msra.mxu0 %v1551_v24  ;;  %v1048_v19 = vrot.slane %v1726_v34, %v1043_v16 }
 0x129   : > { %v948_v42 = vrot.slane %v938_v25, 3  ;;  %v945_v56 = vrot.slane %v937_v55, 3  ;;  %v944_v22 = vrot.slane %v935_v47, 3 }
 0x12a   : > { %v1052_v57 = vmul.f32 %v1048_v19, %v820_v63  ;;  %v1050_v60 = vmul.f32 %v1048_v19, %v1040_v49 }
 0x12b   : > { %v946_v26 = vsel %vm943_vm4, %v944_v22, %v945_v56 }
 0x12c   : > { %v1061_v58 = vrot.slane %v1052_v57, 2  ;;  %v1060_v36 = vrot.slane %v1050_v60, 2 }
 0x12e   : > { %v1062_v40 = vsel %vm910_vm1, %v1060_v36, %v1061_v58 }
 0x17f   : > { %v878_v5 = vpop.permute.xlu0 %877 }
 0x182   : > { %v880_v6 = vpop.permute.xlu1 %879 }
 0x183   : > { %v883_v8 = vsel %vm881_vm3, %v878_v5, %v880_v6  ;;  %v876_v10 = vpop.permute.xlu0 %875 }
 0x184   : > { %v887_v12 = vadd.f32 %v883_v8, %v847_v44  ;;  %v882_v13 = vsel %vm881_vm3, %v876_v10, %v878_v5  ;;  %v1039_v44 = vunpack.c.l.bf16 %v1038_v38 }
 0x185   : > { %v886_v29 = vadd.f32 %v882_v13, %v846_v61 }
 0x186   : > { %v920_v15 = vadd.f32 %v1972_v20, %v887_v12  ;;  %v1044_v20 = vrot.slane %v1721_v33, %v1043_v16 }
 0x187   : > { %v919_v52 = vadd.f32 %v913_v39, %v886_v29  ;;  %v947_v39 = vrot.slane %v936_v54, 3 }
 0x188   : > { %v1051_v61 = vmul.f32 %v1044_v20, %v819_v3  ;;  %v1049_v33 = vmul.f32 %v1044_v20, %v1039_v44 }
 0x189   : > { %v949_v53 = vsel %vm943_vm4, %v947_v39, %v948_v42  ;;  %v952_v51 = vadd.f32 %v946_v26, %v919_v52 }
 0x18a   : > { %v953_v62 = vadd.f32 %v949_v53, %v920_v15  ;;  %v1058_v46 = vrot.slane %v1051_v61, 2  ;;  %v1057_v17 = vrot.slane %v1049_v33, 2  ;;  %v1422_v15 = vld [vmem:[%s2068_s7] ss:$0 sm:$0xff] }
 0x18c   : > { %v1059_v5 = vsel %vm910_vm1, %v1057_v17, %v1058_v46 }
 0x190   : > { %v1000_v59 = vpop.permute.xlu1 %999 }
 0x192   : > { %v1002_v35 = vpop.permute.xlu0 %1001 }
 0x193   : > { %v1004_v34 = vsel %vm881_vm3, %v1000_v59, %v1002_v35 }
 0x194   : > { %v1008_v30 = vadd.f32 %v1004_v34, %v953_v62  ;;  %v998_v31 = vpop.permute.xlu1 %997 }
 0x195   : > { %v1003_v63 = vsel %vm881_vm3, %v998_v31, %v1000_v59 }
 0x196   : > { %v1037_v41 = vadd.f32 %v2005_v37, %v1008_v30  ;;  %v1007_v3 = vadd.f32 %v1003_v63, %v952_v51  ;;  %v1111_v0 = vpop.permute.xlu0 %1110 }
 0x198   : > { %v1036_v43 = vadd.f32 %v2018_v1, %v1007_v3  ;;  %v1113_v45 = vpop.permute.xlu1 %1112  ;;  %v1066_v4 = vadd.f32 %v1062_v40, %v1037_v41 }
 0x199   : > { %v1115_v24 = vsel %vm881_vm3, %v1111_v0, %v1113_v45 }
 0x19a   : > { %v1119_v6 = vadd.f32 %v1115_v24, %v1066_v4  ;;  %v1109_v37 = vpop.permute.xlu0 %1108  ;;  %v1065_v8 = vadd.f32 %v1059_v5, %v1036_v43 }
 0x19b   : > { %v1114_v10 = vsel %vm881_vm3, %v1109_v37, %v1111_v0 }
 0x19c   : > { %v1133_v11 = vadd.f32 %v1129_v2, %v1119_v6  ;;  %v1118_v12 = vadd.f32 %v1114_v10, %v1065_v8 }
 0x19e   : > { %v1132_v13 = vadd.f32 %v1125_v7, %v1118_v12  ;;  %v1135_v1 = vmax.f32 %v1133_v11, 0.0 }
 0x1a0   : > { %v1134_v14 = vmax.f32 %v1132_v13, 0.0  ;;  %v1137_v50 = vpack.c.bf16 %v1135_v1, %v1135_v1 }
 0x1a2   : > { %v1136_v29 = vpack.c.bf16 %v1134_v14, %v1134_v14  ;;  %1305 = vmatprep.mubr.bf16.mxu0 %v1137_v50 }
 0x1a4   : > { %1306 = vmatmul.mubr.bf16.vlgmr.msra.gmra.mrb[12].mxu0 %v1136_v29 }
 0x277   : > { %v1467_v9 = vpop.f32.mrb[12].mxu0 }
 0x278   : > { %v1468_v48 = vpop.f32.mrb[13].mxu0 }
 0x279   : > { %v1469_v52 = vadd.f32 %v1468_v48, %v1467_v9  ;;  %v1470_v18 = vpop.f32.mrb[14].mxu0 }
 0x27a   : > { %v1471_v21 = vpop.f32.mrb[15].mxu0 }
 0x27b   : > { %v1308_v23 = vadd.f32 %v1469_v52, %v1422_v15 }
 0x27d   : > { %v1313_v25 = vpack.c.bf16 %v1308_v23, %v1308_v23 }
 0x27f   : > { %1314 = vst [vmem:[%s303_s23] sm:$0xf] %v1313_v25 }
 0x280 PF: > { %s18_s27 = sadd.s32 1, %s1558_s27  }
 0x281   : > { %p15_p4 = scmp.ge.s32.totalorder %s18_s27, 4  }
 0x283   :  { %17 = sbr.rel (!%p15_p4) target bundleno = 1 (0x1), region = 82 }

// kernel: a_call__.3
= control target key start
LH: loop header
LB: loop body
LE: loop exit
PB: predicated region body
PF: predicated region fallthrough
CT: control target
= control target key end

     0   :  { %s2770_s27 = smov 0   ;;  %s3688_s0 = inlined_call_operand.vmem [shape: bf16[2,10,256], index: 0, kind: input, shape index: {}]   ;;  %s3689_s1 = inlined_call_operand.vmem [shape: f32[10,1024], index: 1, kind: input, shape index: {}]   ;;  %s3690_s2 = inlined_call_operand.vmem [shape: bf16[256,1024], index: 2, kind: input, shape index: {}]   ;;  %s3691_s3 = inlined_call_operand.vmem [shape: f32[1,1024], index: 3, kind: input, shape index: {}]   ;;  %s3692_s4 = inlined_call_operand.vmem [shape: f32[9,512], index: 4, kind: input, shape index: {}]   ;;  %s3693_s5 = inlined_call_operand.vmem [shape: f32[1,512], index: 5, kind: input, shape index: {}]   ;;  %s3694_s6 = inlined_call_operand.vmem [shape: bf16[512,128], index: 6, kind: input, shape index: {}]   ;;  %s3695_s7 = inlined_call_operand.vmem [shape: f32[1,128], index: 7, kind: input, shape index: {}]   ;;  %s3696_s8 = inlined_call_operand.vmem [shape: bf16[2,8,128], index: 8, kind: output, shape index: {}]  }
   0x1 LB: > { %s2422_s28 = sadd.s32 4294967295, %s2721_s27   ;;  %p2426_p0 = scmp.ge.s32.totalorder %s2721_s27, 1  ;;  %s2721_s27 = sphi %s2770_s27, %s18_s27  }
   0x2   : > { %p262_p1 = scmp.lt.s32.totalorder %s2721_s27, 3 }
   0x4   : > { %p263_p2 = pnand %p2426_p0, %p262_p1 }
   0x5   : > { %v307_v0 = vld [vmem:[%s3690_s2] sm:$0xff] (!%p263_p2)  ;;  %v308_v2 = vld [vmem:[%s3690_s2 + $0x8] sm:$0xff] (!%p263_p2)  ;;  %p295_p3 = scmp.lt.s32.totalorder (!%p263_p2), %s2422_s28, 1  ;;  %v437_v57 = vlaneseq (!%p263_p2)  ;;  %s2723_s13 = smov (!%p263_p2), 64   ;;  %vm1471_vm0 = vcmask (!%p263_p2), 523264   ;;  %vm1580_vm1 = vcmask (!%p263_p2), 1046528  }
   0x6   : > { %266 = sbr.rel (%p263_p2) target bundleno = 732 (0x2dc), region = 52  ;;  %v311_v1 = vld [vmem:[%s3690_s2 + $0x20] sm:$0xff] (!%p263_p2)  ;;  %v312_v4 = vld [vmem:[%s3690_s2 + $0x28] sm:$0xff] (!%p263_p2)  ;;  %vm1792_vm2 = vcmask (!%p263_p2), 1045504   ;;  %s2724_s14 = smov (!%p263_p2), 112   ;;  %vm2363_vm3 = vcmask (!%p263_p2), 916480  }
   0x7   : > { %v2433_v3 = vcombine.high (!%p263_p2), %v307_v0, %v311_v1  ;;  %v2432_v5 = vcombine.low (!%p263_p2), %v307_v0, %v311_v1  ;;  %v315_v6 = vld [vmem:[%s3690_s2 + $0x40] sm:$0xff] (!%p263_p2)  ;;  %v2435_v8 = vcombine.high (!%p263_p2), %v308_v2, %v312_v4  ;;  %v2434_v9 = vcombine.low (!%p263_p2), %v308_v2, %v312_v4  ;;  %v316_v11 = vld [vmem:[%s3690_s2 + $0x48] sm:$0xff] (!%p263_p2) }
   0x8   : > { %v319_v7 = vld [vmem:[%s3690_s2 + $0x60] sm:$0xff] (!%p263_p2)  ;;  %v320_v12 = vld [vmem:[%s3690_s2 + $0x68] sm:$0xff] (!%p263_p2)  ;;  %v2897_v2 = vshrl.u32 (!%p263_p2), %v437_v57, 7 }
   0x9   : > { %v2441_v10 = vcombine.high (!%p263_p2), %v315_v6, %v319_v7  ;;  %v323_v13 = vld [vmem:[%s3690_s2 + $0x80] sm:$0xff] (!%p263_p2)  ;;  %1127 = vmatprep.subr.bf16.mxu0 (!%p263_p2), %v2433_v3  ;;  %v2443_v14 = vcombine.high (!%p263_p2), %v316_v11, %v320_v12  ;;  %v324_v16 = vld [vmem:[%s3690_s2 + $0x88] sm:$0xff] (!%p263_p2)  ;;  %1170 = vmatprep.subr.bf16.mxu1 (!%p263_p2), %v2435_v8  ;;  %v2440_v18 = vcombine.low (!%p263_p2), %v315_v6, %v319_v7 }
   0xa   : > { %v327_v15 = vld [vmem:[%s3690_s2 + $0xa0] sm:$0xff] (!%p263_p2)  ;;  %v328_v17 = vld [vmem:[%s3690_s2 + $0xa8] sm:$0xff] (!%p263_p2)  ;;  %1128 = vmatpush1.bf16.msra.mxu0 (!%p263_p2), %v2432_v5  ;;  %1171 = vmatpush1.bf16.msra.mxu1 (!%p263_p2), %v2434_v9  ;;  %v2442_v19 = vcombine.low (!%p263_p2), %v316_v11, %v320_v12  ;;  %v2912_v11 = vsub.s32 (!%p263_p2), 1, %v2897_v2 }
   0xb   : > { %1129 = vmatprep.subr.bf16.mxu0 (!%p263_p2), %v2441_v10  ;;  %v2449_v20 = vcombine.high (!%p263_p2), %v323_v13, %v327_v15  ;;  %1172 = vmatprep.subr.bf16.mxu1 (!%p263_p2), %v2443_v14  ;;  %v2451_v21 = vcombine.high (!%p263_p2), %v324_v16, %v328_v17  ;;  %v331_v22 = vld [vmem:[%s3690_s2 + $0xc0] sm:$0xff] (!%p263_p2)  ;;  %v332_v24 = vld [vmem:[%s3690_s2 + $0xc8] sm:$0xff] (!%p263_p2)  ;;  %v2448_v26 = vcombine.low (!%p263_p2), %v323_v13, %v327_v15 }
   0xc   : > { %v335_v23 = vld [vmem:[%s3690_s2 + $0xe0] sm:$0xff] (!%p263_p2)  ;;  %v336_v25 = vld [vmem:[%s3690_s2 + $0xe8] sm:$0xff] (!%p263_p2)  ;;  %v2450_v27 = vcombine.low (!%p263_p2), %v324_v16, %v328_v17 }
   0xd   : > { %v2457_v28 = vcombine.high %v331_v22, %v335_v23  ;;  %v2459_v29 = vcombine.high %v332_v24, %v336_v25  ;;  %v339_v30 = vld [vmem:[%s3690_s2 + $0x100] sm:$0xff]  ;;  %v340_v32 = vld [vmem:[%s3690_s2 + $0x108] sm:$0xff]  ;;  %v2456_v34 = vcombine.low %v331_v22, %v335_v23  ;;  %s3698_s28 = smov (!%p295_p3, %s2422_s28), 1  ;;  %v2458_v35 = vcombine.low %v332_v24, %v336_v25  ;;  %v2947_v25 = vld [vmem:[%s3692_s4 + $0x18] sm:$0xff] }
   0xe   : > { %1130 = vmatpush1.bf16.msra.mxu0 %v2440_v18  ;;  %1173 = vmatpush1.bf16.msra.mxu1 %v2442_v19  ;;  %v343_v31 = vld [vmem:[%s3690_s2 + $0x120] sm:$0xff]  ;;  %v344_v33 = vld [vmem:[%s3690_s2 + $0x128] sm:$0xff]  ;;  %s2607_s15 = sshll.u32 %s3698_s28, 4 }
   0xf   : > { %1131 = vmatprep.subr.bf16.mxu0 %v2449_v20  ;;  %1174 = vmatprep.subr.bf16.mxu1 %v2451_v21  ;;  %v2465_v36 = vcombine.high %v339_v30, %v343_v31  ;;  %v2467_v37 = vcombine.high %v340_v32, %v344_v33  ;;  %v347_v38 = vld [vmem:[%s3690_s2 + $0x140] sm:$0xff]  ;;  %v348_v40 = vld [vmem:[%s3690_s2 + $0x148] sm:$0xff]  ;;  %v2464_v42 = vcombine.low %v339_v30, %v343_v31  ;;  %s2872_s26 = scalar_lea.vmem %s3688_s0, %s2607_s15  ;;  %v2932_v20 = vld [vmem:[%s3692_s4 + $0x10] sm:$0xff]  ;;  %s2429_s15 = sshll.u32 %s3698_s28, 2 }
  0x10   : > { %v351_v39 = vld [vmem:[%s3690_s2 + $0x160] sm:$0xff]  ;;  %v352_v41 = vld [vmem:[%s3690_s2 + $0x168] sm:$0xff]  ;;  %v2466_v43 = vcombine.low %v340_v32, %v344_v33  ;;  %v1454_v23 = vrot.slane %v2932_v20, %v2912_v11  ;;  %v1458_v33 = vrot.slane %v2947_v25, %v2912_v11  ;;  %s303_s18 = scalar_lea.vmem %s3696_s8, %s2429_s15 }
  0x11   : > { %v2473_v44 = vcombine.high %v347_v38, %v351_v39  ;;  %v2475_v45 = vcombine.high %v348_v40, %v352_v41  ;;  %v355_v46 = vld [vmem:[%s3690_s2 + $0x180] sm:$0xff]  ;;  %v356_v48 = vld [vmem:[%s3690_s2 + $0x188] sm:$0xff]  ;;  %v2472_v50 = vcombine.low %v347_v38, %v351_v39  ;;  %v2474_v51 = vcombine.low %v348_v40, %v352_v41 }
  0x12   : > { %1132 = vmatpush1.bf16.msra.mxu0 %v2448_v26  ;;  %1175 = vmatpush1.bf16.msra.mxu1 %v2450_v27  ;;  %v359_v47 = vld [vmem:[%s3690_s2 + $0x1a0] sm:$0xff]  ;;  %v360_v49 = vld [vmem:[%s3690_s2 + $0x1a8] sm:$0xff]  ;;  %v2950_v26 = vsub.s32 4, %v2897_v2 }
  0x13   : > { %1133 = vmatprep.subr.bf16.mxu0 %v2457_v28  ;;  %1176 = vmatprep.subr.bf16.mxu1 %v2459_v29  ;;  %v2481_v52 = vcombine.high %v355_v46, %v359_v47  ;;  %v2483_v53 = vcombine.high %v356_v48, %v360_v49  ;;  %v363_v54 = vld [vmem:[%s3690_s2 + $0x1c0] sm:$0xff]  ;;  %v364_v58 = vld [vmem:[%s3690_s2 + $0x1c8] sm:$0xff]  ;;  %v2480_v60 = vcombine.low %v355_v46, %v359_v47  ;;  %v2960_v29 = vsub.s32 7, %v2897_v2 }
  0x14   : > { %v367_v55 = vld [vmem:[%s3690_s2 + $0x1e0] sm:$0xff]  ;;  %v368_v59 = vld [vmem:[%s3690_s2 + $0x1e8] sm:$0xff]  ;;  %v2482_v61 = vcombine.low %v356_v48, %v360_v49  ;;  %1467 = vrot.lane.b32.xlu1 %v1454_v23, %s2723_s13 }
  0x15   : > { %v2881_v56 = vld [vmem:[%s2872_s26 + $0x4] ss:$8 sps:$4 sm:$0x1f]   ;;  %v2489_v62 = vcombine.high %v363_v54, %v367_v55  ;;  %v2491_v63 = vcombine.high %v364_v58, %v368_v59  ;;  %v2488_v5 = vcombine.low %v363_v54, %v367_v55  ;;  %v2490_v6 = vcombine.low %v364_v58, %v368_v59 }
  0x16   : > { %1134 = vmatpush1.bf16.msra.mxu0 %v2456_v34  ;;  %1177 = vmatpush1.bf16.msra.mxu1 %v2458_v35  ;;  %v371_v0 = vld [vmem:[%s3690_s2 + $0x200] sm:$0xff]  ;;  %v372_v3 = vld [vmem:[%s3690_s2 + $0x208] sm:$0xff] }
  0x17   : > { %1135 = vmatprep.subr.bf16.mxu0 %v2465_v36  ;;  %1178 = vmatprep.subr.bf16.mxu1 %v2467_v37  ;;  %v375_v1 = vld [vmem:[%s3690_s2 + $0x220] sm:$0xff]  ;;  %v376_v4 = vld [vmem:[%s3690_s2 + $0x228] sm:$0xff] }
  0x18   : > { %1159 = vmatprep.mubr.bf16.mxu0 %v2881_v56  ;;  %1202 = vmatprep.mubr.bf16.mxu1 %v2881_v56  ;;  %v2497_v7 = vcombine.high %v371_v0, %v375_v1  ;;  %v2499_v8 = vcombine.high %v372_v3, %v376_v4  ;;  %v379_v9 = vld [vmem:[%s3690_s2 + $0x240] sm:$0xff]  ;;  %v380_v12 = vld [vmem:[%s3690_s2 + $0x248] sm:$0xff]  ;;  %v2496_v14 = vcombine.low %v371_v0, %v375_v1 }
  0x19   : > { %v383_v10 = vld [vmem:[%s3690_s2 + $0x260] sm:$0xff]  ;;  %v384_v13 = vld [vmem:[%s3690_s2 + $0x268] sm:$0xff]  ;;  %v2498_v16 = vcombine.low %v372_v3, %v376_v4  ;;  %1469 = vrot.lane.b32.xlu1 %v1458_v33, %s2723_s13  ;;  %v317_v33 = vld [vmem:[%s3690_s2 + $0x50] sm:$0xff] }
  0x1a   : > { %1136 = vmatpush1.bf16.msra.mxu0 %v2464_v42  ;;  %1179 = vmatpush1.bf16.msra.mxu1 %v2466_v43  ;;  %v387_v15 = vld [vmem:[%s3690_s2 + $0x280] sm:$0xff]  ;;  %v2505_v17 = vcombine.high %v379_v9, %v383_v10  ;;  %v388_v19 = vld [vmem:[%s3690_s2 + $0x288] sm:$0xff]  ;;  %v2507_v21 = vcombine.high %v380_v12, %v384_v13  ;;  %v2504_v30 = vcombine.low %v379_v9, %v383_v10 }
  0x1b   : > { %1137 = vmatprep.subr.bf16.mxu0 %v2473_v44  ;;  %1180 = vmatprep.subr.bf16.mxu1 %v2475_v45  ;;  %v391_v18 = vld [vmem:[%s3690_s2 + $0x2a0] sm:$0xff]  ;;  %v392_v22 = vld [vmem:[%s3690_s2 + $0x2a8] sm:$0xff]  ;;  %v2506_v34 = vcombine.low %v380_v12, %v384_v13  ;;  %v1830_v12 = vrot.slane %v2947_v25, %v2960_v29 }
  0x1c   : > { %v2942_v24 = vld [vmem:[%s3692_s4] sm:$0xff]  ;;  %v2957_v28 = vld [vmem:[%s3692_s4 + $0x8] sm:$0xff]  ;;  %v2513_v35 = vcombine.high %v387_v15, %v391_v18  ;;  %v2515_v38 = vcombine.high %v388_v19, %v392_v22  ;;  %v2512_v40 = vcombine.low %v387_v15, %v391_v18  ;;  %v2514_v44 = vcombine.low %v388_v19, %v392_v22 }
  0x1d   : > { %v1446_v27 = vrot.slane %v2942_v24, %v2912_v11  ;;  %v395_v31 = vld [vmem:[%s3690_s2 + $0x2c0] sm:$0xff]  ;;  %v396_v36 = vld [vmem:[%s3690_s2 + $0x2c8] sm:$0xff]  ;;  %v1450_v39 = vrot.slane %v2957_v28, %v2912_v11  ;;  %v1610_v43 = vrot.slane %v2957_v28, %v2950_v26  ;;  %v1606_v49 = vrot.slane %v2942_v24, %v2950_v26 }
  0x1e   : > { %1138 = vmatpush1.bf16.msra.mxu0 %v2472_v50  ;;  %1181 = vmatpush1.bf16.msra.mxu1 %v2474_v51  ;;  %v399_v32 = vld [vmem:[%s3690_s2 + $0x2e0] sm:$0xff]  ;;  %v400_v37 = vld [vmem:[%s3690_s2 + $0x2e8] sm:$0xff]  ;;  %v1822_v0 = vrot.slane %v2957_v28, %v2960_v29  ;;  %v1826_v18 = vrot.slane %v2932_v20, %v2960_v29 }
  0x1f   : > { %1139 = vmatprep.subr.bf16.mxu0 %v2481_v52  ;;  %1182 = vmatprep.subr.bf16.mxu1 %v2483_v53  ;;  %v403_v41 = vld [vmem:[%s3690_s2 + $0x300] sm:$0xff]  ;;  %v2521_v45 = vcombine.high %v395_v31, %v399_v32  ;;  %v404_v46 = vld [vmem:[%s3690_s2 + $0x308] sm:$0xff]  ;;  %v2523_v48 = vcombine.high %v396_v36, %v400_v37  ;;  %v2520_v50 = vcombine.low %v395_v31, %v399_v32 }
  0x20   : > { %1463 = vrot.lane.b32.xlu0 %v1446_v27, %s2723_s13  ;;  %v407_v42 = vld [vmem:[%s3690_s2 + $0x320] sm:$0xff]  ;;  %v408_v47 = vld [vmem:[%s3690_s2 + $0x328] sm:$0xff]  ;;  %1625 = vrot.lane.b32.xlu1 %v1610_v43, %s2723_s13  ;;  %v1618_v53 = vrot.slane %v2947_v25, %v2950_v26  ;;  %v2522_v54 = vcombine.low %v396_v36, %v400_v37 }
  0x21   : > { %v411_v51 = vld [vmem:[%s3690_s2 + $0x340] sm:$0xff]  ;;  %v2529_v55 = vcombine.high %v403_v41, %v407_v42  ;;  %v412_v57 = vld [vmem:[%s3690_s2 + $0x348] sm:$0xff]  ;;  %v2531_v59 = vcombine.high %v404_v46, %v408_v47  ;;  %v2530_v1 = vcombine.low %v404_v46, %v408_v47  ;;  %v309_v27 = vld [vmem:[%s3690_s2 + $0x10] sm:$0xff] }
  0x22   : > { %1140 = vmatpush1.bf16.msra.mxu0 %v2480_v60  ;;  %1183 = vmatpush1.bf16.msra.mxu1 %v2482_v61  ;;  %v415_v52 = vld [vmem:[%s3690_s2 + $0x360] sm:$0xff]  ;;  %v416_v58 = vld [vmem:[%s3690_s2 + $0x368] sm:$0xff]  ;;  %v1614_v60 = vrot.slane %v2932_v20, %v2950_v26  ;;  %v2528_v61 = vcombine.low %v403_v41, %v407_v42  ;;  %v333_v42 = vld [vmem:[%s3690_s2 + $0xd0] sm:$0xff] }
  0x23   : > { %1141 = vmatprep.subr.bf16.mxu0 %v2489_v62  ;;  %1184 = vmatprep.subr.bf16.mxu1 %v2491_v63  ;;  %v419_v62 = vld [vmem:[%s3690_s2 + $0x380] sm:$0xff]  ;;  %v2537_v3 = vcombine.high %v411_v51, %v415_v52  ;;  %v420_v4 = vld [vmem:[%s3690_s2 + $0x388] sm:$0xff]  ;;  %v2538_v13 = vcombine.low %v412_v57, %v416_v58  ;;  %v337_v43 = vld [vmem:[%s3690_s2 + $0xf0] sm:$0xff] }
  0x24   : > { %1465 = vrot.lane.b32.xlu0 %v1450_v39, %s2723_s13  ;;  %v423_v63 = vld [vmem:[%s3690_s2 + $0x3a0] sm:$0xff]  ;;  %1629 = vrot.lane.b32.xlu1 %v1618_v53, %s2723_s13  ;;  %v428_v15 = vld [vmem:[%s3690_s2 + $0x3c8] sm:$0xff] }
  0x25   : > { %v427_v9 = vld [vmem:[%s3690_s2 + $0x3c0] sm:$0xff]  ;;  %v2544_v19 = vcombine.low %v419_v62, %v423_v63  ;;  %v329_v39 = vld [vmem:[%s3690_s2 + $0xb0] sm:$0xff] }
  0x26   : > { %1142 = vmatpush1.bf16.msra.mxu0 %v2488_v5  ;;  %1185 = vmatpush1.bf16.msra.mxu1 %v2490_v6  ;;  %v424_v5 = vld [vmem:[%s3690_s2 + $0x3a8] sm:$0xff]  ;;  %v2539_v6 = vcombine.high %v412_v57, %v416_v58  ;;  %v431_v10 = vld [vmem:[%s3690_s2 + $0x3e0] sm:$0xff]  ;;  %v341_v46 = vld [vmem:[%s3690_s2 + $0x110] sm:$0xff] }
  0x27   : > { %1143 = vmatprep.subr.bf16.mxu0 %v2497_v7  ;;  %1186 = vmatprep.subr.bf16.mxu1 %v2499_v8  ;;  %v1818_v7 = vrot.slane %v2942_v24, %v2960_v29  ;;  %v2536_v8 = vcombine.low %v411_v51, %v415_v52  ;;  %v2553_v22 = vcombine.high %v427_v9, %v431_v10  ;;  %v345_v47 = vld [vmem:[%s3690_s2 + $0x130] sm:$0xff] }
  0x28   : > { %1623 = vrot.lane.b32.xlu0 %v1606_v49, %s2723_s13  ;;  %1837 = vrot.lane.b32.xlu1 %v1822_v0, %s2723_s13  ;;  %v2552_v29 = vcombine.low %v427_v9, %v431_v10  ;;  %v2469_v49 = vcombine.high %v341_v46, %v345_v47  ;;  %v2468_v51 = vcombine.low %v341_v46, %v345_v47  ;;  %v357_v53 = vld [vmem:[%s3690_s2 + $0x190] sm:$0xff]  ;;  %v326_v46 = vld [vmem:[%s3690_s2 + $0x98] sm:$0xff] }
  0x29   : > { %v365_v58 = vld [vmem:[%s3690_s2 + $0x1d0] sm:$0xff]  ;;  %v330_v47 = vld [vmem:[%s3690_s2 + $0xb8] sm:$0xff] }
  0x2a   : > { %1144 = vmatpush1.bf16.msra.mxu0 %v2496_v14  ;;  %1187 = vmatpush1.bf16.msra.mxu1 %v2498_v16  ;;  %v2545_v14 = vcombine.high %v419_v62, %v423_v63  ;;  %v432_v16 = vld [vmem:[%s3690_s2 + $0x3e8] sm:$0xff]  ;;  %v373_v62 = vld [vmem:[%s3690_s2 + $0x210] sm:$0xff] }
  0x2b   : > { %1145 = vmatprep.subr.bf16.mxu0 %v2505_v17  ;;  %1188 = vmatprep.subr.bf16.mxu1 %v2507_v21  ;;  %v2547_v17 = vcombine.high %v420_v4, %v424_v5  ;;  %v2546_v21 = vcombine.low %v420_v4, %v424_v5  ;;  %v2555_v23 = vcombine.high %v428_v15, %v432_v16  ;;  %v377_v63 = vld [vmem:[%s3690_s2 + $0x230] sm:$0xff] }
  0x2c   : > { %1627 = vrot.lane.b32.xlu0 %v1614_v60, %s2723_s13  ;;  %1841 = vrot.lane.b32.xlu1 %v1830_v12, %s2723_s13  ;;  %v2554_v31 = vcombine.low %v428_v15, %v432_v16  ;;  %v385_v4 = vld [vmem:[%s3690_s2 + $0x270] sm:$0xff]  ;;  %v2500_v5 = vcombine.low %v373_v62, %v377_v63 }
  0x2d   : > { %v397_v12 = vld [vmem:[%s3690_s2 + $0x2d0] sm:$0xff] }
  0x2e   : > { %1146 = vmatpush1.bf16.msra.mxu0 %v2504_v30  ;;  %1189 = vmatpush1.bf16.msra.mxu1 %v2506_v34  ;;  %v313_v30 = vld [vmem:[%s3690_s2 + $0x30] sm:$0xff] }
  0x2f   : > { %1147 = vmatprep.subr.bf16.mxu0 %v2513_v35  ;;  %1190 = vmatprep.subr.bf16.mxu1 %v2515_v38  ;;  %v2437_v32 = vcombine.high %v309_v27, %v313_v30  ;;  %v321_v34 = vld [vmem:[%s3690_s2 + $0x70] sm:$0xff]  ;;  %v3067_v35 = vld [vmem:[%s2872_s26] ss:$8 sps:$4 sm:$0x1f]   ;;  %v2436_v36 = vcombine.low %v309_v27, %v313_v30 }
  0x30   : > { %1835 = vrot.lane.b32.xlu0 %v1818_v7, %s2723_s13  ;;  %v2445_v37 = vcombine.high %v317_v33, %v321_v34  ;;  %v325_v38 = vld [vmem:[%s3690_s2 + $0x90] sm:$0xff] }
  0x31   : > { %v2453_v41 = vcombine.high %v325_v38, %v329_v39  ;;  %v389_v7 = vld [vmem:[%s3690_s2 + $0x290] sm:$0xff] }
  0x32   : > { %1148 = vmatpush1.bf16.msra.mxu0 %v2512_v40  ;;  %1191 = vmatpush1.bf16.msra.mxu1 %v2514_v44  ;;  %v2444_v40 = vcombine.low %v317_v33, %v321_v34  ;;  %v2452_v44 = vcombine.low %v325_v38, %v329_v39  ;;  %v405_v16 = vld [vmem:[%s3690_s2 + $0x310] sm:$0xff]  ;;  %v310_v39 = vld [vmem:[%s3690_s2 + $0x18] sm:$0xff] }
  0x33   : > { %1149 = vmatprep.subr.bf16.mxu0 %v2521_v45  ;;  %1192 = vmatprep.subr.bf16.mxu1 %v2523_v48  ;;  %v2461_v45 = vcombine.high %v333_v42, %v337_v43  ;;  %v2460_v48 = vcombine.low %v333_v42, %v337_v43  ;;  %v421_v30 = vld [vmem:[%s3690_s2 + $0x390] sm:$0xff] }
  0x34   : > { %1839 = vrot.lane.b32.xlu0 %v1826_v18, %s2723_s13  ;;  %v429_v33 = vld [vmem:[%s3690_s2 + $0x3d0] sm:$0xff] }
  0x35   : > { %v433_v34 = vld [vmem:[%s3690_s2 + $0x3f0] sm:$0xff] }
  0x36   : > { %1150 = vmatpush1.bf16.msra.mxu0 %v2520_v50  ;;  %1193 = vmatpush1.bf16.msra.mxu1 %v2522_v54  ;;  %v353_v50 = vld [vmem:[%s3690_s2 + $0x170] sm:$0xff]  ;;  %v2556_v38 = vcombine.low %v429_v33, %v433_v34 }
  0x37   : > { %1151 = vmatprep.subr.bf16.mxu0 %v2529_v55  ;;  %1194 = vmatprep.subr.bf16.mxu1 %v2531_v59  ;;  %v361_v54 = vld [vmem:[%s3690_s2 + $0x1b0] sm:$0xff] }
  0x38   : > { %v2485_v57 = vcombine.high %v357_v53, %v361_v54  ;;  %v369_v59 = vld [vmem:[%s3690_s2 + $0x1f0] sm:$0xff]  ;;  %v2484_v60 = vcombine.low %v357_v53, %v361_v54  ;;  %v3190_v54 = vsub.s32 3, %v2897_v2 }
  0x39   : > { %v2492_v0 = vcombine.low %v365_v58, %v369_v59 }
  0x3a   : > { %1152 = vmatpush1.bf16.msra.mxu0 %v2528_v61  ;;  %1195 = vmatpush1.bf16.msra.mxu1 %v2530_v1  ;;  %v2493_v61 = vcombine.high %v365_v58, %v369_v59  ;;  %v2501_v1 = vcombine.high %v373_v62, %v377_v63 }
  0x3b   : > { %1153 = vmatprep.subr.bf16.mxu0 %v2537_v3  ;;  %1196 = vmatprep.subr.bf16.mxu1 %v2539_v6  ;;  %v381_v3 = vld [vmem:[%s3690_s2 + $0x250] sm:$0xff] }
  0x3c   : > { %v2509_v6 = vcombine.high %v381_v3, %v385_v4  ;;  %v2508_v9 = vcombine.low %v381_v3, %v385_v4  ;;  %v1315_v3 = vld [vmem:[%s3689_s1] sm:$0xff] }
  0x3e   : > { %1154 = vmatpush1.bf16.msra.mxu0 %v2536_v8  ;;  %1197 = vmatpush1.bf16.msra.mxu1 %v2538_v13  ;;  %v393_v8 = vld [vmem:[%s3690_s2 + $0x2b0] sm:$0xff] }
  0x3f   : > { %1155 = vmatprep.subr.bf16.mxu0 %v2545_v14  ;;  %1198 = vmatprep.subr.bf16.mxu1 %v2547_v17  ;;  %v2517_v10 = vcombine.high %v389_v7, %v393_v8  ;;  %v401_v13 = vld [vmem:[%s3690_s2 + $0x2f0] sm:$0xff]  ;;  %v2516_v14 = vcombine.low %v389_v7, %v393_v8  ;;  %v1316_v7 = vld [vmem:[%s3689_s1 + $0x8] sm:$0xff] }
  0x40   : > { %v2525_v15 = vcombine.high %v397_v12, %v401_v13  ;;  %v409_v17 = vld [vmem:[%s3690_s2 + $0x330] sm:$0xff]  ;;  %v2524_v18 = vcombine.low %v397_v12, %v401_v13 }
  0x42   : > { %1156 = vmatpush1.bf16.msra.mxu0 %v2544_v19  ;;  %1199 = vmatpush1.bf16.msra.mxu1 %v2546_v21  ;;  %v2533_v19 = vcombine.high %v405_v16, %v409_v17  ;;  %v413_v21 = vld [vmem:[%s3690_s2 + $0x350] sm:$0xff] }
  0x43   : > { %1157 = vmatprep.subr.bf16.mxu0 %v2553_v22  ;;  %1200 = vmatprep.subr.bf16.mxu1 %v2555_v23  ;;  %v417_v22 = vld [vmem:[%s3690_s2 + $0x370] sm:$0xff]  ;;  %v2532_v23 = vcombine.low %v405_v16, %v409_v17 }
  0x44   : > { %v2541_v27 = vcombine.high %v413_v21, %v417_v22 }
  0x46   : > { %1158 = vmatpush1.bf16.msra.mxu0 %v2552_v29  ;;  %1201 = vmatpush1.bf16.msra.mxu1 %v2554_v31  ;;  %v425_v29 = vld [vmem:[%s3690_s2 + $0x3b0] sm:$0xff]  ;;  %v2540_v31 = vcombine.low %v413_v21, %v417_v22 }
  0x47   : > { %1213 = vmatprep.subr.bf16.mxu0 %v2437_v32  ;;  %v2549_v32 = vcombine.high %v421_v30, %v425_v29  ;;  %v1325_v22 = vld [vmem:[%s3689_s1 + $0x50] sm:$0x3] }
  0x49   : > { %1160 = vmatmul.mubr.bf16.vlgmr.msra.gmra.mrb[0].mxu0 %v3067_v35  ;;  %1203 = vmatmul.mubr.bf16.vlgmr.msra.gmra.mrb[0].mxu1 %v3067_v35 }
  0x4a   : > { %1214 = vmatpush1.bf16.msra.mxu0 %v2436_v36  ;;  %1245 = vmatprep.mubr.bf16.mxu0 %v2881_v56  ;;  %v2548_v36 = vcombine.low %v421_v30, %v425_v29 }
  0x4b   : > { %1215 = vmatprep.subr.bf16.mxu0 %v2445_v37  ;;  %1288 = vmatprep.mubr.bf16.mxu1 %v2881_v56  ;;  %v349_v56 = vld [vmem:[%s3690_s2 + $0x150] sm:$0xff]  ;;  %v2557_v37 = vcombine.high %v429_v33, %v433_v34 }
  0x4c   : > { %v2477_v52 = vcombine.high %v349_v56, %v353_v50  ;;  %v2476_v55 = vcombine.low %v349_v56, %v353_v50  ;;  %v2454_v56 = vcombine.low %v326_v46, %v330_v47  ;;  %v3177_v50 = vsub.s32 0, %v2897_v2 }
  0x4e   : > { %1216 = vmatpush1.bf16.msra.mxu0 %v2444_v40  ;;  %v314_v40 = vld [vmem:[%s3690_s2 + $0x38] sm:$0xff] }
  0x4f   : > { %1217 = vmatprep.subr.bf16.mxu0 %v2453_v41  ;;  %v318_v41 = vld [vmem:[%s3690_s2 + $0x58] sm:$0xff]  ;;  %v2438_v42 = vcombine.low %v310_v39, %v314_v40  ;;  %v2439_v43 = vcombine.high %v310_v39, %v314_v40 }
  0x51   : > { %1256 = vmatprep.subr.bf16.mxu1 %v2439_v43 }
  0x52   : > { %1218 = vmatpush1.bf16.msra.mxu0 %v2452_v44  ;;  %v322_v44 = vld [vmem:[%s3690_s2 + $0x78] sm:$0xff]  ;;  %1257 = vmatpush1.bf16.msra.mxu1 %v2438_v42 }
  0x53   : > { %1219 = vmatprep.subr.bf16.mxu0 %v2461_v45  ;;  %v2447_v45 = vcombine.high %v318_v41, %v322_v44  ;;  %v1326_v42 = vld [vmem:[%s3689_s1 + $0x58] sm:$0x3] }
  0x55   : > { %1258 = vmatprep.subr.bf16.mxu1 %v2447_v45 }
  0x56   : > { %1220 = vmatpush1.bf16.msra.mxu0 %v2460_v48  ;;  %v2446_v48 = vcombine.low %v318_v41, %v322_v44 }
  0x57   : > { %1221 = vmatprep.subr.bf16.mxu0 %v2469_v49  ;;  %v2455_v49 = vcombine.high %v326_v46, %v330_v47 }
  0x58   : > { %1259 = vmatpush1.bf16.msra.mxu1 %v2446_v48 }
  0x59   : > { %1260 = vmatprep.subr.bf16.mxu1 %v2455_v49 }
  0x5a   : > { %1222 = vmatpush1.bf16.msra.mxu0 %v2468_v51  ;;  %v3182_v51 = vld [vmem:[%s3691_s3] sm:$0xff] }
  0x5b   : > { %1223 = vmatprep.subr.bf16.mxu0 %v2477_v52  ;;  %v3185_v52 = vsub.s32 2, %v2897_v2  ;;  %v444_v58 = vrot.slane %v3182_v51, %v2912_v11  ;;  %v452_v59 = vrot.slane %v3182_v51, %v3190_v54 }
  0x5c   : > { %1261 = vmatpush1.bf16.msra.mxu1 %v2454_v56 }
  0x5e   : > { %1224 = vmatpush1.bf16.msra.mxu0 %v2476_v55  ;;  %v440_v55 = vrot.slane %v3182_v51, %v3177_v50 }
  0x5f   : > { %1225 = vmatprep.subr.bf16.mxu0 %v2485_v57  ;;  %v448_v57 = vrot.slane %v3182_v51, %v3185_v52 }
  0x62   : > { %1226 = vmatpush1.bf16.msra.mxu0 %v2484_v60 }
  0x63   : > { %1227 = vmatprep.subr.bf16.mxu0 %v2493_v61 }
  0x66   : > { %1228 = vmatpush1.bf16.msra.mxu0 %v2492_v0 }
  0x67   : > { %1229 = vmatprep.subr.bf16.mxu0 %v2501_v1 }
  0x6a   : > { %1230 = vmatpush1.bf16.msra.mxu0 %v2500_v5  ;;  %v1317_v5 = vld [vmem:[%s3689_s1 + $0x10] sm:$0xff] }
  0x6b   : > { %1231 = vmatprep.subr.bf16.mxu0 %v2509_v6 }
  0x6e   : > { %1232 = vmatpush1.bf16.msra.mxu0 %v2508_v9 }
  0x6f   : > { %1233 = vmatprep.subr.bf16.mxu0 %v2517_v10 }
  0x72   : > { %1234 = vmatpush1.bf16.msra.mxu0 %v2516_v14  ;;  %v1323_v14 = vld [vmem:[%s3689_s1 + $0x40] sm:$0x3] }
  0x73   : > { %1235 = vmatprep.subr.bf16.mxu0 %v2525_v15 }
  0x76   : > { %1236 = vmatpush1.bf16.msra.mxu0 %v2524_v18 }
  0x77   : > { %1237 = vmatprep.subr.bf16.mxu0 %v2533_v19  ;;  %v1318_v19 = vld [vmem:[%s3689_s1 + $0x18] sm:$0xff] }
  0x7a   : > { %1238 = vmatpush1.bf16.msra.mxu0 %v2532_v23 }
  0x7b   : > { %1239 = vmatprep.subr.bf16.mxu0 %v2541_v27 }
  0x7e   : > { %1240 = vmatpush1.bf16.msra.mxu0 %v2540_v31 }
  0x7f   : > { %1241 = vmatprep.subr.bf16.mxu0 %v2549_v32  ;;  %v1324_v32 = vld [vmem:[%s3689_s1 + $0x48] sm:$0x3] }
  0x82   : > { %1242 = vmatpush1.bf16.msra.mxu0 %v2548_v36  ;;  %v334_v36 = vld [vmem:[%s3690_s2 + $0xd8] sm:$0xff] }
  0x83   : > { %1243 = vmatprep.subr.bf16.mxu0 %v2557_v37  ;;  %v338_v37 = vld [vmem:[%s3690_s2 + $0xf8] sm:$0xff] }
  0x84   : > { %v2462_v46 = vcombine.low %v334_v36, %v338_v37  ;;  %v2463_v56 = vcombine.high %v334_v36, %v338_v37 }
  0x86   : > { %1244 = vmatpush1.bf16.msra.mxu0 %v2556_v38  ;;  %v3200_v60 = vpop.permute.xlu1 %1467  ;;  %1262 = vmatprep.subr.bf16.mxu1 %v2463_v56  ;;  %v1559_v56 = vrot.slane %v2932_v20, %v3190_v54 }
  0x87   : > { %1263 = vmatpush1.bf16.msra.mxu1 %v2462_v46  ;;  %v1555_v46 = vrot.slane %v2957_v28, %v3190_v54 }
  0x89   : > { %1246 = vmatmul.mubr.bf16.vlgmr.msra.gmra.mrb[4].mxu0 %v3067_v35 }
  0x8b   : > { %v3223_v34 = vpop.permute.xlu1 %1469 }
  0x92   : > { %v3187_v53 = vpop.permute.xlu0 %1463 }
  0x96   : > { %v1466_v62 = vpop.permute.xlu0 %1465 }
 0x11c   : > { %v1161_v61 = vpop.f32.mrb[0].mxu0  ;;  %v1204_v0 = vpop.f32.mrb[0].mxu1 }
 0x11d   : > { %v1162_v63 = vadd.f32 %v1161_v61, %v440_v55  ;;  %v1163_v1 = vpop.f32.mrb[1].mxu0  ;;  %v1205_v4 = vadd.f32 %v1204_v0, %v448_v57  ;;  %v1206_v8 = vpop.f32.mrb[1].mxu1  ;;  %v342_v61 = vld [vmem:[%s3690_s2 + $0x118] sm:$0xff] }
 0x11e   : > { %v1164_v6 = vadd.f32 %v1163_v1, %v444_v58  ;;  %v1165_v9 = vpop.f32.mrb[2].mxu0  ;;  %v1207_v12 = vadd.f32 %v1206_v8, %v452_v59  ;;  %v1208_v15 = vpop.f32.mrb[2].mxu1 }
 0x11f   : > { %v1299_v10 = vmax.f32 %v1162_v63, 0.0  ;;  %v1166_v13 = vadd.f32 %v1165_v9, %v440_v55  ;;  %v1167_v16 = vpop.f32.mrb[3].mxu0  ;;  %v1301_v17 = vmax.f32 %v1205_v4, 0.0  ;;  %v1209_v21 = vadd.f32 %v1208_v15, %v448_v57  ;;  %v1210_v27 = vpop.f32.mrb[3].mxu1  ;;  %v346_v63 = vld [vmem:[%s3690_s2 + $0x138] sm:$0xff] }
 0x120   : > { %v1300_v18 = vmax.f32 %v1164_v6, 0.0  ;;  %v1168_v23 = vadd.f32 %v1167_v16, %v444_v58  ;;  %v1302_v29 = vmax.f32 %v1207_v12, 0.0  ;;  %v1211_v33 = vadd.f32 %v1210_v27, %v452_v59  ;;  %v1624_v59 = vpop.permute.xlu0 %1623  ;;  %v1626_v8 = vpop.permute.xlu1 %1625 }
 0x121   : > { %v1331_v30 = vmul.f32 %v1315_v3, %v1299_v10  ;;  %v1307_v31 = vmax.f32 %v1166_v13, 0.0  ;;  %v1333_v38 = vmul.f32 %v1317_v5, %v1301_v17  ;;  %v1309_v40 = vmax.f32 %v1209_v21, 0.0 }
 0x122   : > { %v1332_v39 = vmul.f32 %v1316_v7, %v1300_v18  ;;  %v1308_v41 = vmax.f32 %v1168_v23, 0.0  ;;  %v1334_v43 = vmul.f32 %v1318_v19, %v1302_v29  ;;  %v1310_v45 = vmax.f32 %v1211_v33, 0.0 }
 0x123   : > { %v1339_v44 = vmul.f32 %v1323_v14, %v1307_v31  ;;  %v1341_v48 = vmul.f32 %v1325_v22, %v1309_v40  ;;  %v1472_v58 = vsel %vm1471_vm0, %v3187_v53, %v1466_v62  ;;  %v1473_v3 = vsel %vm1471_vm0, %v1466_v62, %v3200_v60 }
 0x124   : > { %v2608_v47 = vpack.c.bf16 %v1332_v39, %v1331_v30  ;;  %v1340_v49 = vmul.f32 %v1324_v32, %v1308_v41  ;;  %v2609_v55 = vpack.c.bf16 %v1334_v43, %v1333_v38  ;;  %v1342_v57 = vmul.f32 %v1326_v42, %v1310_v45  ;;  %v1628_v15 = vpop.permute.xlu0 %1627  ;;  %v3264_v18 = vpop.permute.xlu1 %1629 }
 0x125   : > { %v2470_v4 = vcombine.low %v342_v61, %v346_v63  ;;  %v2471_v9 = vcombine.high %v342_v61, %v346_v63  ;;  %v1474_v12 = vsel %vm1471_vm0, %v3200_v60, %v3223_v34  ;;  %v1632_v17 = vsel %vm1471_vm0, %v1626_v8, %v1628_v15 }
 0x126   : > { %1395 = vst [vmem:[#allocation2] sm:$0xff] %v2608_v47  ;;  %v2612_v0 = vpack.c.bf16 %v1340_v49, %v1339_v44  ;;  %v3242_v1 = vunpack.c.h.bf16 %v2608_v47  ;;  %1396 = vst [vmem:[#allocation2 + $0x8] sm:$0xff] %v2609_v55  ;;  %v2613_v5 = vpack.c.bf16 %v1342_v57, %v1341_v48  ;;  %v3246_v6 = vunpack.c.h.bf16 %v2609_v55 }
 0x127   : > { %v3248_v7 = vunpack.c.l.bf16 %v2609_v55  ;;  %v3250_v10 = vunpack.c.l.bf16 %v2608_v47  ;;  %1264 = vmatprep.subr.bf16.mxu1 %v2471_v9  ;;  %v1631_v60 = vsel %vm1471_vm0, %v1624_v59, %v1626_v8  ;;  %v1633_v19 = vsel %vm1471_vm0, %v1628_v15, %v3264_v18 }
 0x128   : > { %1399 = vst [vmem:[#allocation2 + $0x20] sm:$0x11] %v2612_v0  ;;  %v1481_v62 = vmul.f32 %v1472_v58, %v3242_v1  ;;  %1400 = vst [vmem:[#allocation2 + $0x28] sm:$0x11] %v2613_v5  ;;  %v1483_v14 = vmul.f32 %v1474_v12, %v3246_v6  ;;  %1265 = vmatpush1.bf16.msra.mxu1 %v2470_v4  ;;  %v1642_v32 = vmul.f32 %v1633_v19, %v3246_v6  ;;  %v350_v58 = vld [vmem:[%s3690_s2 + $0x158] sm:$0xff]  ;;  %v2679_v4 = vld [vmem:[%s3694_s6] sm:$0xff]  }
 0x129   : > { %v1482_v13 = vmul.f32 %v1473_v3, %v3248_v7  ;;  %v1480_v16 = vmul.f32 %v3187_v53, %v3250_v10  ;;  %v1641_v22 = vmul.f32 %v1632_v17, %v3248_v7  ;;  %v1640_v53 = vmul.f32 %v1631_v60, %v3242_v1  ;;  %v2678_v3 = vld [vmem:[%s3694_s6 + $0x40] sm:$0xff]   ;;  %v2680_v12 = vld [vmem:[%s3694_s6 + $0x48] sm:$0xff]  }
 0x12a   : > { %1492 = vrot.lane.b32.xlu0 %v1481_v62, %s2723_s13  ;;  %v1639_v40 = vmul.f32 %v1624_v59, %v3250_v10  ;;  %v1668_v44 = vrot.slane %v1642_v32, 1  ;;  %v1551_v49 = vrot.slane %v2942_v24, %v3190_v54  ;;  %v463_v61 = vsub.s32 6, %v2897_v2  ;;  %2616 = vmatprep.subr.bf16.mxu0 %v2678_v3 }
 0x12b   : > { %1494 = vrot.lane.b32.xlu1 %v1482_v13, %s2723_s13  ;;  %v1665_v39 = vrot.slane %v1641_v22, 1  ;;  %v1662_v41 = vrot.slane %v1640_v53, 1  ;;  %v1565_v0 = vmul.f32 %v1555_v46, %v3242_v1  ;;  %v1566_v9 = vmul.f32 %v1559_v56, %v3248_v7  ;;  %2617 = vmatpush3.bf16.msra.mxu0 %v2679_v4 }
 0x12c   : > { %v1659_v57 = vrot.slane %v1639_v40, 1  ;;  %v1564_v8 = vmul.f32 %v1551_v49, %v3250_v10  ;;  %v1563_v32 = vrot.slane %v2947_v25, %v3190_v54  ;;  %2618 = vmatprep.subr.bf16.mxu0 %v2680_v12  ;;  %v2684_v40 = vld [vmem:[%s3694_s6 + $0x50] sm:$0xff]  }
 0x12d   : > { %v1584_v22 = vrot.slane %v1565_v0, 1 }
 0x12e   : > { %1490 = vrot.lane.b32.xlu0 %v1480_v16, %s2723_s13  ;;  %v1567_v0 = vmul.f32 %v1563_v32, %v3246_v6 }
 0x12f   : > { %v1542_v21 = vld [vmem:[#allocation2 + $0x20] sm:$0x11]  ;;  %1496 = vrot.lane.b32.xlu1 %v1483_v14, %s2723_s13  ;;  %v1543_v30 = vld [vmem:[#allocation2 + $0x28] sm:$0x11]  ;;  %v3319_v14 = vld [vmem:[#allocation2] sm:$0xee] }
 0x130   : > { %v3271_v23 = vunpack.c.l.bf16 %v1542_v21  ;;  %v3273_v27 = vunpack.c.h.bf16 %v1542_v21  ;;  %v3276_v29 = vunpack.c.l.bf16 %v1543_v30  ;;  %v3278_v31 = vunpack.c.h.bf16 %v1543_v30  ;;  %v3330_v21 = vld [vmem:[#allocation2 + $0x8] sm:$0xee] }
 0x131   : > { %v2682_v30 = vld [vmem:[%s3694_s6 + $0x8] sm:$0xff]  }
 0x132   : > { %v1644_v33 = vmul.f32 %v1624_v59, %v3271_v23  ;;  %v1645_v36 = vmul.f32 %v1631_v60, %v3273_v27  ;;  %v1646_v37 = vmul.f32 %v1632_v17, %v3276_v29  ;;  %v1647_v38 = vmul.f32 %v1633_v19, %v3278_v31  ;;  %v354_v59 = vld [vmem:[%s3690_s2 + $0x178] sm:$0xff]  ;;  %2619 = vmatpush3.bf16.msra.mxu0 %v2682_v30 }
 0x133   : > { %v1569_v62 = vmul.f32 %v1555_v46, %v3273_v27  ;;  %v2478_v13 = vcombine.low %v350_v58, %v354_v59  ;;  %v2479_v15 = vcombine.high %v350_v58, %v354_v59  ;;  %v1568_v16 = vmul.f32 %v1551_v49, %v3271_v23  ;;  %v358_v17 = vld [vmem:[%s3690_s2 + $0x198] sm:$0xff]  ;;  %v2686_v58 = vld [vmem:[%s3694_s6 + $0x10] sm:$0xff]   ;;  %2620 = vmatprep.subr.bf16.mxu0 %v2684_v40 }
 0x134   : > { %v1663_v42 = vrot.slane %v1645_v36, 1  ;;  %v1666_v43 = vrot.slane %v1646_v37, 1  ;;  %v1669_v45 = vrot.slane %v1647_v38, 1  ;;  %v1660_v47 = vrot.slane %v1644_v33, 1  ;;  %v362_v60 = vld [vmem:[%s3690_s2 + $0x1b8] sm:$0xff] }
 0x135   : > { %v1763_v19 = vrot.slane %v2942_v24, %v463_v61  ;;  %v1585_v53 = vrot.slane %v1569_v62, 1  ;;  %1266 = vmatprep.subr.bf16.mxu1 %v2479_v15  ;;  %v1582_v33 = vrot.slane %v1568_v16, 1  ;;  %v1581_v36 = vrot.slane %v1564_v8, 1  ;;  %v366_v24 = vld [vmem:[%s3690_s2 + $0x1d8] sm:$0xff] }
 0x136   : > { %v1664_v48 = vsel %vm1580_vm1, %v1662_v41, %v1663_v42  ;;  %v1667_v55 = vsel %vm1580_vm1, %v1665_v39, %v1666_v43  ;;  %v1670_v63 = vsel %vm1580_vm1, %v1668_v44, %v1669_v45  ;;  %v1661_v5 = vsel %vm1580_vm1, %v1659_v57, %v1660_v47  ;;  %v370_v39 = vld [vmem:[%s3690_s2 + $0x1f8] sm:$0xff]  ;;  %1267 = vmatpush1.bf16.msra.mxu1 %v2478_v13 }
 0x137   : > { %1676 = vrot.lane.b32.xlu1 %v1664_v48, %s2723_s13  ;;  %1678 = vrot.lane.b32.xlu0 %v1667_v55, %s2723_s13  ;;  %v1570_v37 = vmul.f32 %v1559_v56, %v3276_v29  ;;  %v1587_v38 = vrot.slane %v1566_v9, 1  ;;  %v1756_v41 = vunpack.c.l.bf16 %v3319_v14  ;;  %v3349_v42 = vsel %vm1580_vm1, %v1584_v22, %v1585_v53  ;;  %v374_v57 = vld [vmem:[%s3690_s2 + $0x218] sm:$0xff] }
 0x138   : > { %v2486_v43 = vcombine.low %v358_v17, %v362_v60  ;;  %v2487_v44 = vcombine.high %v358_v17, %v362_v60  ;;  %v1767_v45 = vrot.slane %v2957_v28, %v463_v61  ;;  %v3353_v46 = vsel %vm1580_vm1, %v1581_v36, %v1582_v33  ;;  %v378_v28 = vld [vmem:[%s3690_s2 + $0x238] sm:$0xff]  ;;  %2621 = vmatpush3.bf16.msra.mxu0 %v2686_v58 }
 0x139   : > { %v1588_v47 = vrot.slane %v1570_v37, 1  ;;  %v1757_v48 = vunpack.c.h.bf16 %v3319_v14  ;;  %v1771_v49 = vrot.slane %v2932_v20, %v463_v61  ;;  %v1758_v56 = vunpack.c.l.bf16 %v3330_v21  ;;  %v386_v9 = vld [vmem:[%s3690_s2 + $0x278] sm:$0xff]  ;;  %v2698_v14 = vld [vmem:[%s3694_s6 + $0x28] sm:$0xff]  }
 0x13a   : > { %1268 = vmatprep.subr.bf16.mxu1 %v2487_v44  ;;  %v2495_v55 = vcombine.high %v366_v24, %v370_v39  ;;  %v1775_v59 = vrot.slane %v2947_v25, %v463_v61  ;;  %v1759_v20 = vunpack.c.h.bf16 %v3330_v21  ;;  %v1776_v3 = vmul.f32 %v1763_v19, %v1756_v41  ;;  %v382_v61 = vld [vmem:[%s3690_s2 + $0x258] sm:$0xff]  ;;  %v2699_v21 = vld [vmem:[%s3694_s6 + $0xa0] sm:$0xff]  }
 0x13b   : > { %1674 = vrot.lane.b32.xlu1 %v1661_v5, %s2723_s13  ;;  %1680 = vrot.lane.b32.xlu0 %v1670_v63, %s2723_s13  ;;  %v3370_v63 = vsel %vm1580_vm1, %v1587_v38, %v1588_v47  ;;  %v2494_v4 = vcombine.low %v366_v24, %v370_v39  ;;  %v2503_v5 = vcombine.high %v374_v57, %v378_v28  ;;  %v1590_v13 = vrot.slane %v1567_v0, 1 }
 0x13c   : > { %1269 = vmatpush1.bf16.msra.mxu1 %v2486_v43  ;;  %v1777_v8 = vmul.f32 %v1767_v45, %v1757_v48  ;;  %v1778_v25 = vmul.f32 %v1771_v49, %v1758_v56  ;;  %v1779_v12 = vmul.f32 %v1775_v59, %v1759_v20  ;;  %v1571_v62 = vmul.f32 %v1563_v32, %v3278_v31  ;;  %v390_v32 = vld [vmem:[%s3690_s2 + $0x298] sm:$0xff] }
 0x13d   : > { %1270 = vmatprep.subr.bf16.mxu1 %v2495_v55  ;;  %v1780_v15 = vmul.f32 %v1763_v19, %v3271_v23  ;;  %v1793_v16 = vrot.slane %v1776_v3, 2  ;;  %v2502_v17 = vcombine.low %v374_v57, %v378_v28  ;;  %v1781_v60 = vmul.f32 %v1767_v45, %v3273_v27  ;;  %v394_v19 = vld [vmem:[%s3690_s2 + $0x2b8] sm:$0xff] }
 0x13e   : > { %v2511_v22 = vcombine.high %v382_v61, %v386_v9  ;;  %v1591_v53 = vrot.slane %v1571_v62, 1  ;;  %v1782_v33 = vmul.f32 %v1771_v49, %v3276_v29  ;;  %v1796_v36 = vrot.slane %v1777_v8, 2  ;;  %v398_v57 = vld [vmem:[%s3690_s2 + $0x2d8] sm:$0xff] }
 0x13f   : > { %v1794_v30 = vrot.slane %v1780_v15, 2  ;;  %v1799_v37 = vrot.slane %v1778_v25, 2  ;;  %v1797_v38 = vrot.slane %v1781_v60, 2  ;;  %v1802_v24 = vrot.slane %v1779_v12, 2  ;;  %v402_v28 = vld [vmem:[%s3690_s2 + $0x2f8] sm:$0xff] }
 0x140   : > { %1271 = vmatpush1.bf16.msra.mxu1 %v2494_v4  ;;  %v3398_v39 = vsel %vm1580_vm1, %v1590_v13, %v1591_v53  ;;  %v1783_v43 = vmul.f32 %v1775_v59, %v3278_v31  ;;  %v2510_v44 = vcombine.low %v382_v61, %v386_v9  ;;  %v1800_v47 = vrot.slane %v1782_v33, 2  ;;  %v406_v4 = vld [vmem:[%s3690_s2 + $0x318] sm:$0xff] }
 0x141   : > { %1272 = vmatprep.subr.bf16.mxu1 %v2503_v5  ;;  %v3401_v40 = vsel %vm1792_vm2, %v1793_v16, %v1794_v30  ;;  %v3405_v45 = vsel %vm1792_vm2, %v1796_v36, %v1797_v38  ;;  %v2519_v49 = vcombine.high %v390_v32, %v394_v19  ;;  %v2518_v0 = vcombine.low %v390_v32, %v394_v19  ;;  %v410_v5 = vld [vmem:[%s3690_s2 + $0x338] sm:$0xff]  ;;  %v1320_v38 = vld [vmem:[%s3689_s1 + $0x28] sm:$0xff] }
 0x142   : > { %v1803_v55 = vrot.slane %v1783_v43, 2  ;;  %v3414_v58 = vsel %vm1792_vm2, %v1799_v37, %v1800_v47  ;;  %v2527_v3 = vcombine.high %v398_v57, %v402_v28  ;;  %v2526_v8 = vcombine.low %v398_v57, %v402_v28  ;;  %v414_v61 = vld [vmem:[%s3690_s2 + $0x358] sm:$0xff]  ;;  %v1319_v37 = vld [vmem:[%s3689_s1 + $0x20] sm:$0xff] }
 0x143   : > { %v2535_v25 = vcombine.high %v406_v4, %v410_v5  ;;  %v418_v9 = vld [vmem:[%s3690_s2 + $0x378] sm:$0xff]  ;;  %v2534_v12 = vcombine.low %v406_v4, %v410_v5  ;;  %v3432_v62 = vsub.s32 5, %v2897_v2  ;;  %v456_v15 = vrot.slane %v3182_v51, %v2950_v26 }
 0x144   : > { %1273 = vmatpush1.bf16.msra.mxu1 %v2502_v17  ;;  %v3417_v59 = vsel %vm1792_vm2, %v1802_v24, %v1803_v55  ;;  %v2543_v13 = vcombine.high %v414_v61, %v418_v9  ;;  %v422_v16 = vld [vmem:[%s3690_s2 + $0x398] sm:$0xff] }
 0x145   : > { %1274 = vmatprep.subr.bf16.mxu1 %v2511_v22  ;;  %v426_v17 = vld [vmem:[%s3690_s2 + $0x3b8] sm:$0xff]  ;;  %v460_v60 = vrot.slane %v3182_v51, %v3432_v62  ;;  %v2542_v22 = vcombine.low %v414_v61, %v418_v9 }
 0x146   : > { %v2551_v53 = vcombine.high %v422_v16, %v426_v17  ;;  %v430_v26 = vld [vmem:[%s3690_s2 + $0x3d8] sm:$0xff] }
 0x147   : > { %v434_v36 = vld [vmem:[%s3690_s2 + $0x3f8] sm:$0xff] }
 0x148   : > { %1275 = vmatpush1.bf16.msra.mxu1 %v2510_v44  ;;  %v2550_v44 = vcombine.low %v422_v16, %v426_v17  ;;  %v2559_v57 = vcombine.high %v430_v26, %v434_v36  ;;  %v1836_v16 = vpop.permute.xlu0 %1835  ;;  %v2685_v17 = vld [vmem:[%s3694_s6 + $0xc8] sm:$0xff]  }
 0x149   : > { %1276 = vmatprep.subr.bf16.mxu1 %v2519_v49  ;;  %v1327_v49 = vld [vmem:[%s3689_s1 + $0x60] sm:$0x3] }
 0x14c   : > { %1277 = vmatpush1.bf16.msra.mxu1 %v2518_v0 }
 0x14d   : > { %1278 = vmatprep.subr.bf16.mxu1 %v2527_v3  ;;  %v1328_v3 = vld [vmem:[%s3689_s1 + $0x68] sm:$0x3] }
 0x150   : > { %1279 = vmatpush1.bf16.msra.mxu1 %v2526_v8 }
 0x151   : > { %1280 = vmatprep.subr.bf16.mxu1 %v2535_v25  ;;  %v2558_v25 = vcombine.low %v430_v26, %v434_v36  ;;  %v2689_v26 = vld [vmem:[%s3694_s6 + $0xd0] sm:$0xff]  }
 0x154   : > { %1281 = vmatpush1.bf16.msra.mxu1 %v2534_v12  ;;  %v2681_v12 = vld [vmem:[%s3694_s6 + $0xc0] sm:$0xff]  }
 0x155   : > { %1282 = vmatprep.subr.bf16.mxu1 %v2543_v13 }
 0x158   : > { %1283 = vmatpush1.bf16.msra.mxu1 %v2542_v22  ;;  %v2690_v22 = vld [vmem:[%s3694_s6 + $0x18] sm:$0xff]  }
 0x159   : > { %1284 = vmatprep.subr.bf16.mxu1 %v2551_v53  ;;  %v2687_v53 = vld [vmem:[%s3694_s6 + $0x88] sm:$0xff]  }
 0x15c   : > { %v1247_v2 = vpop.f32.mrb[4].mxu0  ;;  %1285 = vmatpush1.bf16.msra.mxu1 %v2550_v44 }
 0x15d   : > { %v1248_v30 = vadd.f32 %v1247_v2, %v456_v15  ;;  %v1249_v33 = vpop.f32.mrb[5].mxu0  ;;  %1286 = vmatprep.subr.bf16.mxu1 %v2559_v57  ;;  %v1838_v2 = vpop.permute.xlu1 %1837  ;;  %v1856_v57 = vmul.f32 %v1836_v16, %v3271_v23  ;;  %v2695_v23 = vld [vmem:[%s3694_s6 + $0x98] sm:$0xff]  }
 0x15e   : > { %v1250_v51 = vadd.f32 %v1249_v33, %v460_v60  ;;  %v1251_v32 = vpop.f32.mrb[6].mxu0  ;;  %v1840_v33 = vpop.permute.xlu0 %1839 }
 0x15f   : > { %v1303_v19 = vmax.f32 %v1248_v30, 0.0  ;;  %v1252_v24 = vadd.f32 %v1251_v32, %v456_v15  ;;  %v1253_v43 = vpop.f32.mrb[7].mxu0  ;;  %v2683_v15 = vld [vmem:[%s3694_s6 + $0x80] sm:$0xff]   ;;  %v1843_v30 = vsel %vm1471_vm0, %v1836_v16, %v1838_v2 }
 0x160   : > { %v1304_v47 = vmax.f32 %v1250_v51, 0.0  ;;  %v1254_v55 = vadd.f32 %v1253_v43, %v460_v60  ;;  %1287 = vmatpush1.bf16.msra.mxu1 %v2558_v25  ;;  %v2688_v60 = vld [vmem:[%s3694_s6 + $0x58] sm:$0xff]   ;;  %v1857_v36 = vmul.f32 %v1843_v30, %v3273_v27  ;;  %v2694_v32 = vld [vmem:[%s3694_s6 + $0x20] sm:$0xff]   ;;  %v1844_v43 = vsel %vm1471_vm0, %v1838_v2, %v1840_v33  ;;  %v2691_v27 = vld [vmem:[%s3694_s6 + $0x90] sm:$0xff]  }
 0x161   : > { %v1335_v28 = vmul.f32 %v1319_v37, %v1303_v19  ;;  %v1311_v0 = vmax.f32 %v1252_v24, 0.0  ;;  %2638 = vmatprep.subr.bf16.mxu1 %v2681_v12  ;;  %2622 = vmatprep.subr.bf16.mxu0 %v2688_v60  ;;  %v1852_v19 = vmul.f32 %v1843_v30, %v1757_v48  ;;  %v2693_v48 = vld [vmem:[%s3694_s6 + $0xd8] sm:$0xff]   ;;  %v2701_v30 = vld [vmem:[%s3694_s6 + $0xe8] sm:$0xff]  }
 0x162   : > { %v1336_v4 = vmul.f32 %v1320_v38, %v1304_v47  ;;  %v1312_v5 = vmax.f32 %v1254_v55, 0.0  ;;  %2623 = vmatpush3.bf16.msra.mxu0 %v2690_v22  ;;  %v1842_v38 = vpop.permute.xlu1 %1841 }
 0x163   : > { %v1343_v8 = vmul.f32 %v1327_v49, %v1311_v0  ;;  %1289 = vmatmul.mubr.bf16.vlgmr.msra.gmra.mrb[4].mxu1 %v3067_v35  ;;  %v2692_v35 = vld [vmem:[%s3694_s6 + $0x60] sm:$0xff]   ;;  %v1845_v0 = vsel %vm1471_vm0, %v1840_v33, %v1842_v38  ;;  %v2702_v33 = vld [vmem:[%s3694_s6 + $0x30] sm:$0xff]  }
 0x164   : > { %v2610_v61 = vpack.c.bf16 %v1336_v4, %v1335_v28  ;;  %v1344_v9 = vmul.f32 %v1328_v3, %v1312_v5  ;;  %2639 = vmatpush3.bf16.msra.mxu1 %v2683_v15  ;;  %2624 = vmatprep.subr.bf16.mxu0 %v2692_v35  ;;  %v1875_v28 = vrot.slane %v1857_v36, 2  ;;  %v1853_v3 = vmul.f32 %v1844_v43, %v1758_v56 }
 0x165   : > { %2640 = vmatprep.subr.bf16.mxu1 %v2685_v17  ;;  %v1858_v4 = vmul.f32 %v1844_v43, %v3276_v29  ;;  %v1851_v5 = vmul.f32 %v1836_v16, %v1756_v41  ;;  %v2696_v29 = vld [vmem:[%s3694_s6 + $0x68] sm:$0xff]   ;;  %v1872_v41 = vrot.slane %v1856_v57, 2  ;;  %v1854_v12 = vmul.f32 %v1845_v0, %v1759_v20 }
 0x166   : > { %1397 = vst [vmem:[#allocation2 + $0x10] sm:$0xff] %v2610_v61  ;;  %v2614_v13 = vpack.c.bf16 %v1344_v9, %v1343_v8  ;;  %2625 = vmatpush3.bf16.msra.mxu0 %v2694_v32  ;;  %v1874_v8 = vrot.slane %v1852_v19, 2  ;;  %v1859_v15 = vmul.f32 %v1845_v0, %v3278_v31  ;;  %v1877_v16 = vrot.slane %v1853_v3, 2  ;;  %v2703_v32 = vld [vmem:[%s3694_s6 + $0xa8] sm:$0xff]   ;;  %v2705_v19 = vld [vmem:[%s3694_s6 + $0xf0] sm:$0xff]  }
 0x167   : > { %v1878_v17 = vrot.slane %v1858_v4, 2  ;;  %2626 = vmatprep.subr.bf16.mxu0 %v2696_v29  ;;  %v1871_v22 = vrot.slane %v1851_v5, 2  ;;  %v2709_v5 = vld [vmem:[%s3694_s6 + $0xb8] sm:$0xff]  }
 0x168   : > { %1401 = vst [vmem:[#allocation2 + $0x30] sm:$0x11] %v2614_v13  ;;  %2641 = vmatpush3.bf16.msra.mxu1 %v2687_v53  ;;  %v1876_v13 = vsel %vm1792_vm2, %v1874_v8, %v1875_v28  ;;  %v2700_v53 = vld [vmem:[%s3694_s6 + $0x70] sm:$0xff]   ;;  %v1881_v36 = vrot.slane %v1859_v15, 2  ;;  %v2708_v28 = vld [vmem:[%s3694_s6 + $0xf8] sm:$0xff]  }
 0x169   : > { %2642 = vmatprep.subr.bf16.mxu1 %v2689_v26  ;;  %v1873_v31 = vsel %vm1792_vm2, %v1871_v22, %v1872_v41  ;;  %v1880_v26 = vrot.slane %v1854_v12, 2  ;;  %v2711_v12 = vld [vmem:[%s3692_s4] sm:$0xff] }
 0x16a   : > { %2627 = vmatpush3.bf16.msra.mxu0 %v2698_v14 }
 0x16b   : > { %2628 = vmatprep.subr.bf16.mxu0 %v2700_v53  ;;  %v1882_v43 = vsel %vm1792_vm2, %v1880_v26, %v1881_v36 }
 0x16c   : > { %2643 = vmatpush3.bf16.msra.mxu1 %v2691_v27  ;;  %v2343_v27 = vld [vmem:[%s2872_s26] sm:$0xff] }
 0x16d   : > { %v1441_v37 = vld [vmem:[#allocation2 + $0x10] sm:$0xf]  ;;  %2644 = vmatprep.subr.bf16.mxu1 %v2693_v48 }
 0x16e   : > { %v1442_v51 = vunpack.c.l.bf16 %v1441_v37  ;;  %v1813_v47 = vld [vmem:[#allocation2 + $0x10] sm:$0xe]  ;;  %v1879_v37 = vsel %vm1792_vm2, %v1877_v16, %v1878_v17  ;;  %2629 = vmatpush3.bf16.msra.mxu0 %v2702_v33 }
 0x16f   : > { %v1601_v24 = vld [vmem:[#allocation2 + $0x30] sm:$0x1]  ;;  %v1814_v25 = vunpack.c.l.bf16 %v1813_v47 }
 0x170   : > { %v1602_v44 = vunpack.c.l.bf16 %v1601_v24  ;;  %v1484_v49 = vmul.f32 %v3223_v34, %v1442_v51  ;;  %v1643_v55 = vmul.f32 %v3264_v18, %v1442_v51  ;;  %2645 = vmatpush3.bf16.msra.mxu1 %v2695_v23  ;;  %v2704_v51 = vld [vmem:[%s3694_s6 + $0x78] sm:$0xff]   ;;  %v2707_v47 = vld [vmem:[%s3694_s6 + $0xb0] sm:$0xff]  }
 0x171   : > { %v1855_v2 = vmul.f32 %v1842_v38, %v1814_v25  ;;  %v2706_v24 = vld [vmem:[%s3694_s6 + $0x38] sm:$0xff]   ;;  %2630 = vmatprep.subr.bf16.mxu0 %v2704_v51  ;;  %v2712_v17 = vld [vmem:[%s3692_s4 + $0x10] sm:$0xff] }
 0x172   : > { %1498 = vrot.lane.b32.xlu0 %v1484_v49, %s2723_s13  ;;  %v1648_v34 = vmul.f32 %v3264_v18, %v1602_v44  ;;  %v1671_v61 = vrot.slane %v1643_v55, 1  ;;  %v2697_v18 = vld [vmem:[%s3694_s6 + $0xe0] sm:$0xff]   ;;  %v1860_v56 = vmul.f32 %v1842_v38, %v1602_v44  ;;  %v2344_v44 = vld [vmem:[%s2872_s26 + $0x8] sm:$0x11]  ;;  %v2345_v49 = vunpack.c.l.bf16 %v2343_v27  ;;  %2631 = vmatpush3.bf16.msra.mxu0 %v2706_v24 }
 0x173   : > { %2646 = vmatprep.subr.bf16.mxu1 %v2697_v18  ;;  %v1883_v35 = vrot.slane %v1855_v2, 2  ;;  %v2346_v55 = vunpack.c.h.bf16 %v2343_v27  ;;  %v2347_v48 = vunpack.c.l.bf16 %v2344_v44  ;;  %v2348_v57 = vunpack.c.h.bf16 %v2344_v44 }
 0x174   : > { %v1672_v9 = vrot.slane %v1648_v34, 1  ;;  %v1884_v20 = vrot.slane %v1860_v56, 2  ;;  %2647 = vmatpush3.bf16.msra.mxu1 %v2699_v21  ;;  %v2353_v0 = vrot.slane %v2345_v49, 1  ;;  %v3581_v56 = vld [vmem:[#allocation2 + $0xc] sm:$0xff]  ;;  %v1521_v21 = vrot.slane %v2711_v12, %v3185_v52 }
 0x175   : > { %2648 = vmatprep.subr.bf16.mxu1 %v2701_v30  ;;  %v2354_v3 = vrot.slane %v2347_v48, 1  ;;  %v2356_v4 = vrot.slane %v2346_v55, 1  ;;  %v2357_v34 = vrot.slane %v2348_v57, 1  ;;  %v1529_v30 = vrot.slane %v2712_v17, %v3185_v52 }
 0x176   : > { %1888 = vrot.lane.b32.xlu0 %v1876_v13, %s2723_s13  ;;  %v1673_v60 = vsel %vm1580_vm1, %v1671_v61, %v1672_v9  ;;  %v1885_v38 = vsel %vm1792_vm2, %v1883_v35, %v1884_v20  ;;  %v1512_v61 = vld [vmem:[#allocation2 + $0x4] sm:$0xff]  ;;  %v1420_v13 = vrot.slane %v2711_v12, %v3177_v50  ;;  %v1516_v33 = vunpack.c.l.bf16 %v3581_v56 }
 0x177   : > { %1682 = vrot.lane.b32.xlu1 %v1673_v60, %s2723_s13  ;;  %v2355_v8 = vsel %vm1580_vm1, %v2353_v0, %v2354_v3  ;;  %v2358_v25 = vsel %vm1580_vm1, %v2356_v4, %v2357_v34  ;;  %v2710_v9 = vld [vmem:[%s3692_s4 + $0x8] sm:$0xff]  ;;  %v1515_v18 = vunpack.c.h.bf16 %v1512_v61  ;;  %v1428_v60 = vrot.slane %v2712_v17, %v3177_v50 }
 0x178   : > { %2649 = vmatpush3.bf16.msra.mxu1 %v2703_v32  ;;  %v2670_v23 = vpack.i.bf16 %v2358_v25, %v2355_v8  ;;  %v1424_v29 = vrot.slane %v2710_v9, %v3177_v50  ;;  %v1525_v14 = vrot.slane %v2710_v9, %v3185_v52  ;;  %v1514_v2 = vunpack.c.l.bf16 %v1512_v61  ;;  %v3594_v20 = vld [vmem:[#allocation2 + $0x24] sm:$0x11] }
 0x179   : > { %2650 = vmatprep.subr.bf16.mxu1 %v2705_v19  ;;  %v1433_v26 = vmul.f32 %v1420_v13, %v3250_v10  ;;  %v1435_v51 = vmul.f32 %v1428_v60, %v3248_v7  ;;  %v1699_v32 = vunpack.c.h.bf16 %v3594_v20  ;;  %v1536_v44 = vmul.f32 %v1529_v30, %v1516_v33 }
 0x17a   : > { %1886 = vrot.lane.b32.xlu0 %v1873_v31, %s2723_s13  ;;  %v1434_v16 = vmul.f32 %v1424_v29, %v3242_v1  ;;  %v1535_v31 = vmul.f32 %v1525_v14, %v1515_v18  ;;  %v1698_v7 = vunpack.c.l.bf16 %v3594_v20 }
 0x17b   : > { %1890 = vrot.lane.b32.xlu1 %v1879_v37, %s2723_s13 }
 0x17c   : > { %2651 = vmatpush3.bf16.msra.mxu1 %v2707_v47  ;;  %v1709_v47 = vrot.slane %v2710_v9, %v3432_v62 }
 0x17d   : > { %2652 = vmatprep.subr.bf16.mxu1 %v2708_v28  ;;  %v1705_v28 = vrot.slane %v2711_v12, %v3432_v62 }
 0x17e   : > { %1894 = vrot.lane.b32.xlu0 %v1885_v38, %s2723_s13  ;;  %v1534_v38 = vmul.f32 %v1521_v21, %v1514_v2  ;;  %v1723_v48 = vmul.f32 %v1709_v47, %v1699_v32  ;;  %v1719_v3 = vmul.f32 %v1709_v47, %v1515_v18 }
 0x17f   : > { %1892 = vrot.lane.b32.xlu1 %v1882_v43, %s2723_s13  ;;  %v3606_v43 = vld [vmem:[#allocation2 + $0x2c] sm:$0x11]  ;;  %v1722_v34 = vmul.f32 %v1705_v28, %v1698_v7  ;;  %v1718_v61 = vmul.f32 %v1705_v28, %v1514_v2 }
 0x180   : > { %2653 = vmatpush3.bf16.msra.mxu1 %v2709_v5  ;;  %v1700_v57 = vunpack.c.l.bf16 %v3606_v43  ;;  %v1738_v8 = vrot.slane %v1723_v48, 1  ;;  %v1737_v9 = vrot.slane %v1719_v3, 1 }
 0x181   : > { %v1735_v12 = vrot.slane %v1722_v34, 1 }
 0x183   : > { %2671 = vrot.lane.b32.xlu1 %v2670_v23, %s2724_s14 }
 0x19c   : > { %v1493_v41 = vpop.permute.xlu0 %1492 }
 0x19d   : > { %v1495_v15 = vpop.permute.xlu1 %1494 }
 0x19e   : > { %v1501_v22 = vsel %vm1471_vm0, %v1493_v41, %v1495_v15 }
 0x19f   : > { %v1509_v53 = vadd.f32 %v1501_v22, %v1434_v16 }
 0x1a0   : > { %v1491_v1 = vpop.permute.xlu0 %1490 }
 0x1a1   : > { %v1539_v36 = vadd.f32 %v1535_v31, %v1509_v53  ;;  %v3599_v37 = vpop.permute.xlu1 %1496  ;;  %v1500_v35 = vsel %vm1471_vm0, %v1491_v1, %v1493_v41 }
 0x1a2   : > { %v1502_v19 = vsel %vm1471_vm0, %v1495_v15, %v3599_v37  ;;  %v1508_v24 = vadd.f32 %v1500_v35, %v1433_v26  ;;  %v1734_v15 = vrot.slane %v1718_v61, 1 }
 0x1a3   : > { %v1510_v27 = vadd.f32 %v1502_v19, %v1435_v51  ;;  %v1598_v10 = vadd.f32 %v3349_v42, %v1539_v36  ;;  %v1713_v42 = vrot.slane %v2712_v17, %v3432_v62  ;;  %v2713_v51 = vld [vmem:[%s3692_s4 + $0x18] sm:$0xff]  ;;  %v1908_v19 = vld [vmem:[#allocation2 + $0x4] sm:$0xee] }
 0x1a4   : > { %v1538_v49 = vadd.f32 %v1534_v38, %v1508_v24  ;;  %v1736_v2 = vsel %vm1580_vm1, %v1734_v15, %v1735_v12  ;;  %v1432_v35 = vrot.slane %v2713_v51, %v3177_v50  ;;  %v1701_v38 = vunpack.c.h.bf16 %v3606_v43  ;;  %v2571_v12 = vld [vmem:[%s3692_s4 + $0x38] ss:$0 sm:$0xff] }
 0x1a5   : > { %v1540_v55 = vadd.f32 %v1536_v44, %v1510_v27  ;;  %v1724_v25 = vmul.f32 %v1713_v42, %v1700_v57  ;;  %v1720_v14 = vmul.f32 %v1713_v42, %v1516_v33  ;;  %v1533_v24 = vrot.slane %v2713_v51, %v3185_v52 }
 0x1a6   : > { %v1597_v0 = vadd.f32 %v3353_v46, %v1538_v49  ;;  %v1739_v46 = vsel %vm1580_vm1, %v1737_v9, %v1738_v8  ;;  %v1717_v27 = vrot.slane %v2713_v51, %v3432_v62  ;;  %v1910_v44 = vunpack.c.l.bf16 %v1908_v19  ;;  %v1909_v62 = vld [vmem:[#allocation2 + $0xc] sm:$0xee]  ;;  %v1966_v9 = vld [vmem:[%s3693_s5] sm:$0xf] }
 0x1a7   : > { %v1599_v4 = vadd.f32 %v3370_v63, %v1540_v55  ;;  %v1741_v63 = vrot.slane %v1724_v25, 1  ;;  %v1740_v22 = vrot.slane %v1720_v14, 1  ;;  %v1911_v47 = vunpack.c.h.bf16 %v1908_v19 }
 0x1a8   : > { %v1725_v55 = vmul.f32 %v1717_v27, %v1701_v38  ;;  %v1913_v20 = vunpack.c.h.bf16 %v1909_v62 }
 0x1a9   : > { %v1677_v5 = vpop.permute.xlu1 %1676  ;;  %v1679_v23 = vpop.permute.xlu0 %1678  ;;  %v1742_v33 = vsel %vm1580_vm1, %v1740_v22, %v1741_v63 }
 0x1aa   : > { %v1685_v29 = vsel %vm1471_vm0, %v1677_v5, %v1679_v23  ;;  %v1744_v8 = vrot.slane %v1725_v55, 1 }
 0x1ab   : > { %v1693_v41 = vadd.f32 %v1685_v29, %v1598_v10  ;;  %v2568_v10 = vld [vmem:[%s3692_s4 + $0x20] ss:$0 sm:$0xff] }
 0x1ac   : > { %v1930_v3 = vmul.f32 %v2568_v10, %v1910_v44 }
 0x1ad   : > { %v1675_v18 = vpop.permute.xlu1 %1674  ;;  %v1751_v13 = vadd.f32 %v1739_v46, %v1693_v41  ;;  %v1681_v17 = vpop.permute.xlu0 %1680 }
 0x1ae   : > { %v1684_v16 = vsel %vm1471_vm0, %v1675_v18, %v1677_v5  ;;  %v1686_v21 = vsel %vm1471_vm0, %v1679_v23, %v1681_v17  ;;  %v1946_v29 = vrot.slane %v1930_v3, 2 }
 0x1af   : > { %v1692_v60 = vadd.f32 %v1684_v16, %v1597_v0  ;;  %v1694_v31 = vadd.f32 %v1686_v21, %v1599_v4  ;;  %v1810_v53 = vadd.f32 %v3405_v45, %v1751_v13  ;;  %v1517_v45 = vunpack.c.h.bf16 %v3581_v56  ;;  %v2569_v56 = vld [vmem:[%s3692_s4 + $0x28] ss:$0 sm:$0xff] }
 0x1b0   : > { %v1935_v4 = vmul.f32 %v2569_v56, %v1699_v32  ;;  %v1931_v5 = vmul.f32 %v2569_v56, %v1911_v47  ;;  %v1937_v13 = vmul.f32 %v2571_v12, %v1701_v38  ;;  %v1971_v16 = vrot.slane %v1966_v9, %v3177_v50 }
 0x1b1   : > { %v1750_v30 = vadd.f32 %v1736_v2, %v1692_v60  ;;  %v1752_v1 = vadd.f32 %v1742_v33, %v1694_v31  ;;  %v1537_v48 = vmul.f32 %v1533_v24, %v1517_v45  ;;  %v1721_v0 = vmul.f32 %v1717_v27, %v1517_v45 }
 0x1b2   : > { %v1950_v41 = vrot.slane %v1935_v4, 2  ;;  %v1949_v18 = vrot.slane %v1931_v5, 2  ;;  %v1956_v50 = vrot.slane %v1937_v13, 2 }
 0x1b3   : > { %v1809_v26 = vadd.f32 %v3401_v40, %v1750_v30  ;;  %v3629_v36 = vadd.f32 %v3414_v58, %v1752_v1  ;;  %v1436_v40 = vmul.f32 %v1432_v35, %v3246_v6  ;;  %v1934_v6 = vmul.f32 %v2568_v10, %v1698_v7  ;;  %v2570_v7 = vld [vmem:[%s3692_s4 + $0x30] ss:$0 sm:$0xff] }
 0x1b4   : > { %v1743_v32 = vrot.slane %v1721_v0, 1  ;;  %v1936_v63 = vmul.f32 %v2570_v7, %v1700_v57  ;;  %v1933_v30 = vmul.f32 %v2571_v12, %v1913_v20  ;;  %v1951_v1 = vsel %vm1792_vm2, %v1949_v18, %v1950_v41  ;;  %v2572_v20 = vld [vmem:[%s3695_s7] ss:$0 sm:$0xff] }
 0x1b5   : > { %v1947_v14 = vrot.slane %v1934_v6, 2  ;;  %v1975_v57 = vrot.slane %v1966_v9, %v2912_v11 }
 0x1b6   : > { %v1745_v15 = vsel %vm1580_vm1, %v1743_v32, %v1744_v8  ;;  %v1953_v19 = vrot.slane %v1936_v63, 2 }
 0x1b7   : > { %v1948_v33 = vsel %vm1792_vm2, %v1946_v29, %v1947_v14 }
 0x1e4   : > { %v1499_v58 = vpop.permute.xlu0 %1498 }
 0x1e5   : > { %v1503_v49 = vsel %vm1471_vm0, %v3599_v37, %v1499_v58  ;;  %v1912_v37 = vunpack.c.l.bf16 %v1909_v62 }
 0x1e6   : > { %v1511_v28 = vadd.f32 %v1503_v49, %v1436_v40  ;;  %v1955_v40 = vrot.slane %v1933_v30, 2  ;;  %v1983_v49 = vrot.slane %v1966_v9, %v3190_v54 }
 0x1e7   : > { %v1932_v22 = vmul.f32 %v2570_v7, %v1912_v37 }
 0x1e8   : > { %v1541_v42 = vadd.f32 %v1537_v48, %v1511_v28  ;;  %v1889_v34 = vpop.permute.xlu0 %1888  ;;  %v1957_v56 = vsel %vm1792_vm2, %v1955_v40, %v1956_v50 }
 0x1e9   : > { %v1683_v25 = vpop.permute.xlu1 %1682  ;;  %v1952_v24 = vrot.slane %v1932_v22, 2 }
 0x1ea   : > { %v1600_v23 = vadd.f32 %v3398_v39, %v1541_v42  ;;  %v1687_v61 = vsel %vm1471_vm0, %v1681_v17, %v1683_v25 }
 0x1ec   : > { %v1695_v39 = vadd.f32 %v1687_v61, %v1600_v23  ;;  %v1887_v46 = vpop.permute.xlu0 %1886 }
 0x1ed   : > { %v1896_v17 = vsel %vm1471_vm0, %v1887_v46, %v1889_v34  ;;  %v1891_v60 = vpop.permute.xlu1 %1890 }
 0x1ee   : > { %v1753_v21 = vadd.f32 %v1745_v15, %v1695_v39  ;;  %v1904_v2 = vadd.f32 %v1896_v17, %v1809_v26  ;;  %v1897_v31 = vsel %vm1471_vm0, %v1889_v34, %v1891_v60  ;;  %v1979_v26 = vrot.slane %v1966_v9, %v3185_v52 }
 0x1ef   : > { %v1905_v43 = vadd.f32 %v1897_v31, %v1810_v53 }
 0x1f0   : > { %v1962_v51 = vadd.f32 %v1948_v33, %v1904_v2  ;;  %v1895_v35 = vpop.permute.xlu0 %1894  ;;  %v1812_v38 = vadd.f32 %v3417_v59, %v1753_v21  ;;  %v1954_v59 = vsel %vm1792_vm2, %v1952_v24, %v1953_v19 }
 0x1f1   : > { %v1963_v45 = vadd.f32 %v1951_v1, %v1905_v43  ;;  %v1893_v27 = vpop.permute.xlu1 %1892 }
 0x1f2   : > { %v1988_v44 = vadd.f32 %v1971_v16, %v1962_v51  ;;  %v1898_v58 = vsel %vm1471_vm0, %v1891_v60, %v1893_v27  ;;  %v1899_v10 = vsel %vm1471_vm0, %v1893_v27, %v1895_v35 }
 0x1f3   : > { %v1906_v53 = vadd.f32 %v1898_v58, %v3629_v36  ;;  %v1907_v11 = vadd.f32 %v1899_v10, %v1812_v38  ;;  %v1989_v47 = vadd.f32 %v1975_v57, %v1963_v45 }
 0x1f4   : > { %v1992_v55 = vmax.f32 %v1988_v44, 0.0 }
 0x1f5   : > { %v1964_v48 = vadd.f32 %v1954_v59, %v1906_v53  ;;  %v1965_v52 = vadd.f32 %v1957_v56, %v1907_v11  ;;  %v1993_v28 = vmax.f32 %v1989_v47, 0.0  ;;  %v2672_v23 = vpop.permute.xlu1 %2671 }
 0x1f6   : > { %v1996_v6 = vpack.c.bf16 %v1992_v55, %v1992_v55  ;;  %v2674_v29 = vunpack.i.h.bf16 %v2672_v23  ;;  %v2673_v14 = vunpack.i.l.bf16 %v2672_v23 }
 0x1f7   : > { %v1990_v62 = vadd.f32 %v1979_v26, %v1964_v48  ;;  %v1997_v0 = vpack.c.bf16 %v1993_v28, %v1993_v28  ;;  %v1991_v3 = vadd.f32 %v1983_v49, %v1965_v52 }
 0x1f8   : > { %v2364_v63 = vsel %vm2363_vm3, %v2673_v14, %v2674_v29 }
 0x1f9   : > { %v1994_v4 = vmax.f32 %v1990_v62, 0.0  ;;  %2295 = vmatprep.mubr.bf16.mxu0 %v1997_v0  ;;  %v1995_v42 = vmax.f32 %v1991_v3, 0.0 }
 0x1fa   : > { %2296 = vmatmul.mubr.bf16.vlgmr.msra.gmra.mrb[8].mxu0 %v1996_v6 }
 0x1fb   : > { %v1999_v36 = vpack.c.bf16 %v1995_v42, %v1995_v42  ;;  %v1998_v34 = vpack.c.bf16 %v1994_v4, %v1994_v4 }
 0x1fd   : > { %2335 = vmatprep.mubr.bf16.mxu1 %v1999_v36 }
 0x1fe   : > { %2336 = vmatmul.mubr.bf16.vlgmr.msra.gmra.mrb[8].mxu1 %v1998_v34 }
 0x236   : > { %v1290_v54 = vpop.f32.mrb[4].mxu1 }
 0x237   : > { %v1292_v5 = vpop.f32.mrb[5].mxu1 }
 0x238   : > { %v1294_v8 = vpop.f32.mrb[6].mxu1 }
 0x239   : > { %v1296_v25 = vpop.f32.mrb[7].mxu1 }
 0x2cd   : > { %v2632_v37 = vpop.f32.mrb[8].mxu0 }
 0x2ce   : > { %v2633_v61 = vpop.f32.mrb[9].mxu0 }
 0x2cf   : > { %v2634_v9 = vadd.f32 %v2633_v61, %v2632_v37  ;;  %v2635_v7 = vpop.f32.mrb[10].mxu0 }
 0x2d0   : > { %v2636_v32 = vpop.f32.mrb[11].mxu0 }
 0x2d1   : > { %v2654_v41 = vpop.f32.mrb[8].mxu1  ;;  %v2298_v39 = vadd.f32 %v2634_v9, %v2572_v20 }
 0x2d2   : > { %v2655_v12 = vpop.f32.mrb[9].mxu1 }
 0x2d3   : > { %v2656_v46 = vadd.f32 %v2655_v12, %v2654_v41  ;;  %v2657_v18 = vpop.f32.mrb[10].mxu1 }
 0x2d4   : > { %v2658_v13 = vpop.f32.mrb[11].mxu1 }
 0x2d5   : > { %v2338_v15 = vadd.f32 %v2656_v46, %v2298_v39 }
 0x2d7   : > { %v2366_v16 = vadd.f32 %v2364_v63, %v2338_v15 }
 0x2d9   : > { %v2367_v17 = vpack.c.bf16 %v2366_v16, %v2366_v16 }
 0x2db   : > { %2368 = vst [vmem:[%s303_s18] sm:$0xf] %v2367_v17 }
 0x2dc PF: > { %s18_s27 = sadd.s32 1, %s2721_s27  }
 0x2dd   : > { %p15_p4 = scmp.ge.s32.totalorder %s18_s27, 4  }
 0x2df   :  { %17 = sbr.rel (!%p15_p4) target bundleno = 1 (0x1), region = 82 }

</bundles_post_ra>
